<compile_context>
chip_gen: v7x
topology: tpu7x:2x2x1
jax: 0.10.0
libtpu: 0.0.40
codegen_flags: <defaults>
</compile_context>

<pallas_src>
import functools
import math

import jax
import jax.numpy as jnp
import numpy as np
from jax.experimental import pallas as pl
from jax.experimental.pallas import tpu as pltpu

# torchvision.ops.sigmoid_focal_loss defaults (gamma == 2 hard-coded below)
FOCAL_ALPHA = 0.25
# cfg.TRAIN.LAMBDA (deterministic synthetic config value)
LAMBDA = 1.0
# yaw smooth-L1 is broadcast-added onto 3 columns in the reference -> weight 3/pi
_YAW_WEIGHT = 3.0 / math.pi

ALIGN = 4096      # site alignment: keeps every lane-dense int8 block (32,128)-tiled
MAX_TILE = 32768  # target sites per grid step (shrunk for wide C below)

# per-site regression-mask code (times the site mask):
#   col 0 -> 3 (marks "count this site once"), col 6 -> 2 (yaw), others -> 1
_REG_CODE = np.array([3, 1, 1, 1, 1, 1, 2], dtype=np.int8)


def _round_up(x, m):
    return ((x + m - 1) // m) * m


def _cdiv(a, b):
    return -(-a // b)


def _proposal_loss_kernel(p_cls_ref, tm_cls_ref, p_reg_ref, g_reg_ref, m_reg_ref,
                          part_ref, *, cls_tile_elems, reg_tile_elems,
                          cls_valid_elems, reg_valid_elems, ragged):
    # ---------------- classification: sigmoid focal loss -------------------
    x = p_cls_ref[...]                                  # (rc, 128) f32 logits
    v = tm_cls_ref[...].astype(jnp.float32)             # code: 0 ignore / 1 neg / 3 pos
    t = jnp.where(v == 3.0, 1.0, 0.0)
    m = jnp.minimum(v, 1.0)

    z = (2.0 * t - 1.0) * x                             # logit of the true class
    e = jnp.exp(-jnp.abs(z))
    ce = jnp.maximum(-z, 0.0) + jnp.log1p(e)            # stable BCE-with-logits
    one_minus_pt = jnp.where(z >= 0.0, e, 1.0) / (1.0 + e)
    alpha_t = FOCAL_ALPHA * t + (1.0 - FOCAL_ALPHA) * (1.0 - t)
    focal = alpha_t * ce * one_minus_pt * one_minus_pt  # gamma == 2

    cls_w = focal * m
    cls_m = m
    if ragged:  # last tile may read past the array end -> predicate, not multiply
        row = jax.lax.broadcasted_iota(jnp.int32, x.shape, 0)
        lane = jax.lax.broadcasted_iota(jnp.int32, x.shape, 1)
        ok = (pl.program_id(0) * cls_tile_elems + row * 128 + lane) < cls_valid_elems
        cls_w = jnp.where(ok, cls_w, 0.0)
        cls_m = jnp.where(ok, cls_m, 0.0)
    cls_num = jnp.sum(cls_w)
    cls_den = jnp.sum(cls_m)

    # ---------------- regression: smooth-L1 (beta = 1) ---------------------
    d = p_reg_ref[...] - g_reg_ref[...]                 # (rr, 128) f32, flat (site,col)
    ad = jnp.abs(d)
    sl1 = jnp.where(ad < 1.0, 0.5 * d * d, ad - 0.5)

    r = m_reg_ref[...].astype(jnp.float32)              # code: 0 / 1 / 2(yaw) / 3(col 0)
    wm = jnp.where(r == 2.0, _YAW_WEIGHT, jnp.minimum(r, 1.0))  # mask*column-weight
    reg_w = sl1 * wm
    reg_m = jnp.where(r == 3.0, 1.0, 0.0)               # counts each positive site once
    if ragged:
        row = jax.lax.broadcasted_iota(jnp.int32, d.shape, 0)
        lane = jax.lax.broadcasted_iota(jnp.int32, d.shape, 1)
        ok = (pl.program_id(0) * reg_tile_elems + row * 128 + lane) < reg_valid_elems
        reg_w = jnp.where(ok, reg_w, 0.0)
        reg_m = jnp.where(ok, reg_m, 0.0)
    reg_num = jnp.sum(reg_w)
    reg_den = jnp.sum(reg_m)

    # ---------------- pack 4 partial sums into this tile's (8,128) block ----
    rid = jax.lax.broadcasted_iota(jnp.int32, (8, 128), 0)
    part_ref[...] = (jnp.where(rid == 0, cls_num, 0.0)
                     + jnp.where(rid == 1, cls_den, 0.0)
                     + jnp.where(rid == 2, reg_num, 0.0)
                     + jnp.where(rid == 3, reg_den, 0.0))


@jax.jit
def proposal_loss(P_cls, G_cls, M_cls, P_reg, G_reg, M_reg):
    C = P_cls.shape[-1]
    N = math.prod(P_cls.shape[:-1])

    # ---- tile selection: big tiles, even count when possible (v7x) --------
    bytes_per_site = 5 * C + 63                 # f32+int8 cls, 2x f32 + int8 reg
    max_tile = min(MAX_TILE,
                   max(ALIGN, (6 << 20) // bytes_per_site // ALIGN * ALIGN))
    n_pad = _round_up(N, ALIGN)
    if n_pad <= max_tile:
        nt = 2 if n_pad > ALIGN else 1          # give both v7x cores work if possible
    else:
        nt = _cdiv(n_pad, max_tile)
        if nt % 2:
            nt += 1                             # balance across 2 TensorCores
    tile = _round_up(_cdiv(n_pad, nt), ALIGN)
    nt = _cdiv(n_pad, tile)
    ragged = (n_pad % tile) != 0                # last tile handled in-kernel

    # ---- build the five HBM streams (narrow codes for targets/masks) ------
    p_cls = P_cls.reshape(N, C).astype(jnp.float32)
    tm_cls = (M_cls.reshape(N, C).astype(jnp.int8)
              * (1 + 2 * G_cls.reshape(N, C).astype(jnp.int8)))      # 0 / 1 / 3
    p_reg = P_reg.reshape(N, 7).astype(jnp.float32)
    g_reg = G_reg.reshape(N, 7).astype(jnp.float32)
    m_reg = M_reg.reshape(N, 1).astype(jnp.int8) * jnp.asarray(_REG_CODE)

    if n_pad != N:  # pad only to the alignment granule; padded sites carry zero masks
        pad = ((0, n_pad - N), (0, 0))
        p_cls = jnp.pad(p_cls, pad)
        tm_cls = jnp.pad(tm_cls, pad)
        p_reg = jnp.pad(p_reg, pad)
        g_reg = jnp.pad(g_reg, pad)
        m_reg = jnp.pad(m_reg, pad)

    # ---- lane-dense views (free reshapes of contiguous buffers) -----------
    rc, rr = n_pad * C // 128, n_pad * 7 // 128
    p_cls = p_cls.reshape(rc, 128)
    tm_cls = tm_cls.reshape(rc, 128)
    p_reg = p_reg.reshape(rr, 128)
    g_reg = g_reg.reshape(rr, 128)
    m_reg = m_reg.reshape(rr, 128)

    rc_t, rr_t = tile * C // 128, tile * 7 // 128

    kernel = functools.partial(
        _proposal_loss_kernel,
        cls_tile_elems=tile * C, reg_tile_elems=tile * 7,
        cls_valid_elems=n_pad * C, reg_valid_elems=n_pad * 7,
        ragged=ragged)

    partials = pl.pallas_call(
        kernel,
        out_shape=jax.ShapeDtypeStruct((nt * 8, 128), jnp.float32),
        grid=(nt,),
        in_specs=[
            pl.BlockSpec((rc_t, 128), lambda i: (i, 0)),   # P_cls (f32, lane-dense)
            pl.BlockSpec((rc_t, 128), lambda i: (i, 0)),   # packed G_cls/M_cls (int8)
            pl.BlockSpec((rr_t, 128), lambda i: (i, 0)),   # P_reg (f32, flat 7/site)
            pl.BlockSpec((rr_t, 128), lambda i: (i, 0)),   # G_reg (f32, flat 7/site)
            pl.BlockSpec((rr_t, 128), lambda i: (i, 0)),   # encoded M_reg (int8)
        ],
        out_specs=pl.BlockSpec((8, 128), lambda i: (i, 0)),  # per-tile partial sums
        compiler_params=pltpu.CompilerParams(
            dimension_semantics=("parallel",),   # tiles independent -> both v7x TCs
            vmem_limit_bytes=32 * 1024 * 1024,
        ),
    )(p_cls, tm_cls, p_reg, g_reg, m_reg)

    # combine the 4 partial scalars per tile (lanes replicated; take lane 0)
    sums = partials[:, 0].reshape(nt, 8).sum(axis=0)
    cls_loss = sums[0] / sums[1]
    reg_loss = sums[2] / sums[3]
    loss = cls_loss + LAMBDA * reg_loss
    return dict(cls_loss=cls_loss, reg_loss=reg_loss, loss=loss)


def _reference(P_cls, G_cls, M_cls, P_reg, G_reg, M_reg):
    """Pure-JAX reference mirroring the PyTorch module."""
    x = P_cls.astype(jnp.float32)
    t = G_cls.astype(jnp.float32)
    m = M_cls.astype(jnp.float32)
    ce = jnp.maximum(x, 0.0) - x * t + jnp.log1p(jnp.exp(-jnp.abs(x)))
    p = jax.nn.sigmoid(x)
    p_t = p * t + (1 - p) * (1 - t)
    alpha_t = FOCAL_ALPHA * t + (1 - FOCAL_ALPHA) * (1 - t)
    focal = alpha_t * ce * (1 - p_t) ** 2
    cls_loss = jnp.sum(focal * m) / jnp.sum(m)

    d = P_reg.astype(jnp.float32) - G_reg.astype(jnp.float32)
    ad = jnp.abs(d)
    sl1 = jnp.where(ad < 1.0, 0.5 * d * d, ad - 0.5)
    comb = sl1[..., 0:3] + sl1[..., 3:6] + sl1[..., 6:7] / math.pi
    mr = M_reg.astype(jnp.float32)
    reg_loss = jnp.sum(comb * mr) / jnp.sum(mr)
    return cls_loss, reg_loss, cls_loss + LAMBDA * reg_loss


def _make_inputs(key, B, A, C):
    kq, kg, kmc, kpr, kgr, kmr = jax.random.split(key, 6)
    P_cls = jax.random.normal(kq, (B, A, C), dtype=jnp.float32)
    G_cls = (jax.random.uniform(kg, (B, A, C)) > 0.8).astype(jnp.int32)
    M_cls = jax.random.uniform(kmc, (B, A, C)) > 0.2
    P_reg = jax.random.normal(kpr, (B, A, 7), dtype=jnp.float32)
    G_reg = jax.random.normal(kgr, (B, A, 7), dtype=jnp.float32)
    M_reg = jax.random.uniform(kmr, (B, A, 1)) > 0.5
    # guarantee non-empty masks (all-false -> NaN, matching the PyTorch module)
    M_cls = M_cls.at[0, 0, 0].set(True)
    M_reg = M_reg.at[0, 0, 0].set(True)
    return P_cls, G_cls, M_cls, P_reg, G_reg, M_reg


def _check(args, rtol):
    losses = proposal_loss(*args)
    jax.block_until_ready(losses)
    ref_cls, ref_reg, ref_tot = _reference(*args)
    np.testing.assert_allclose(np.asarray(losses["cls_loss"]), np.asarray(ref_cls),
                               rtol=rtol, atol=1e-6)
    np.testing.assert_allclose(np.asarray(losses["reg_loss"]), np.asarray(ref_reg),
                               rtol=rtol, atol=1e-6)
    np.testing.assert_allclose(np.asarray(losses["loss"]), np.asarray(ref_tot),
                               rtol=rtol, atol=1e-6)


if __name__ == "__main__":
    key = jax.random.PRNGKey(0)
    k_small, k_big = jax.random.split(key, 2)

    # small module-consistent shapes: batch=2, anchor sites=128, classes=4
    _check(_make_inputs(k_small, B=2, A=128, C=4), rtol=1e-4)

    # larger check that exercises multi-tile + the ragged last tile path
    _check(_make_inputs(k_big, B=5, A=7000, C=4), rtol=2e-4)

    print("KERNEL_OK")
</pallas_src>

<mosaic_0001>
module attributes {stable_mosaic.version = 11 : i64} {
  func.func @_proposal_loss_kernel(%arg0: i32, %arg1: memref<128x128xf32, #tpu.memory_space<vmem>>, %arg2: memref<128x128xi8, #tpu.memory_space<vmem>>, %arg3: memref<224x128xf32, #tpu.memory_space<vmem>>, %arg4: memref<224x128xf32, #tpu.memory_space<vmem>>, %arg5: memref<224x128xi8, #tpu.memory_space<vmem>>, %arg6: memref<8x128xf32, #tpu.memory_space<vmem>>) attributes {dimension_semantics = [#tpu.dimension_semantics<parallel>], iteration_bounds = array<i64: 1>, scalar_prefetch = 0 : i64, scratch_operands = 0 : i64, tpu.core_type = #tpu.core_type<tc>, window_params = [{transform_indices = @transform_0, window_bounds = array<i64: 128, 128>}, {transform_indices = @transform_1, window_bounds = array<i64: 128, 128>}, {transform_indices = @transform_2, window_bounds = array<i64: 224, 128>}, {transform_indices = @transform_3, window_bounds = array<i64: 224, 128>}, {transform_indices = @transform_4, window_bounds = array<i64: 224, 128>}, {transform_indices = @transform_5, window_bounds = array<i64: 8, 128>}]} {
    %c0 = arith.constant 0 : index
    %c0_0 = arith.constant 0 : index
    %0 = vector.load %arg1[%c0, %c0_0] : memref<128x128xf32, #tpu.memory_space<vmem>>, vector<128x128xf32>
    %c0_1 = arith.constant 0 : index
    %c0_2 = arith.constant 0 : index
    %1 = vector.load %arg2[%c0_1, %c0_2] : memref<128x128xi8, #tpu.memory_space<vmem>>, vector<128x128xi8>
    %2 = arith.sitofp %1 : vector<128x128xi8> to vector<128x128xf32>
    %cst = arith.constant 3.000000e+00 : f32
    %3 = vector.broadcast %cst : f32 to vector<128x128xf32>
    %4 = arith.cmpf oeq, %2, %3 : vector<128x128xf32>
    %cst_3 = arith.constant 1.000000e+00 : f32
    %cst_4 = arith.constant 0.000000e+00 : f32
    %5 = vector.broadcast %cst_3 : f32 to vector<128x128xf32>
    %6 = vector.broadcast %cst_4 : f32 to vector<128x128xf32>
    %7 = arith.select %4, %5, %6 : vector<128x128xi1>, vector<128x128xf32>
    %cst_5 = arith.constant 1.000000e+00 : f32
    %8 = vector.broadcast %cst_5 : f32 to vector<128x128xf32>
    %9 = arith.minimumf %2, %8 : vector<128x128xf32>
    %cst_6 = arith.constant 2.000000e+00 : f32
    %10 = vector.broadcast %cst_6 : f32 to vector<128x128xf32>
    %11 = arith.mulf %10, %7 : vector<128x128xf32>
    %cst_7 = arith.constant 1.000000e+00 : f32
    %12 = vector.broadcast %cst_7 : f32 to vector<128x128xf32>
    %13 = arith.subf %11, %12 : vector<128x128xf32>
    %14 = arith.mulf %13, %0 : vector<128x128xf32>
    %15 = math.absf %14 : vector<128x128xf32>
    %cst_8 = arith.constant 0.000000e+00 : f32
    %16 = vector.broadcast %cst_8 : f32 to vector<128x128xf32>
    %17 = arith.subf %16, %15 : vector<128x128xf32>
    %18 = math.exp %17 : vector<128x128xf32>
    %cst_9 = arith.constant 0.000000e+00 : f32
    %19 = vector.broadcast %cst_9 : f32 to vector<128x128xf32>
    %20 = arith.subf %19, %14 : vector<128x128xf32>
    %cst_10 = arith.constant 0.000000e+00 : f32
    %21 = vector.broadcast %cst_10 : f32 to vector<128x128xf32>
    %22 = arith.maximumf %20, %21 : vector<128x128xf32>
    %23 = math.log1p %18 : vector<128x128xf32>
    %24 = arith.addf %22, %23 : vector<128x128xf32>
    %cst_11 = arith.constant 0.000000e+00 : f32
    %25 = vector.broadcast %cst_11 : f32 to vector<128x128xf32>
    %26 = arith.cmpf oge, %14, %25 : vector<128x128xf32>
    %cst_12 = arith.constant 1.000000e+00 : f32
    %27 = vector.broadcast %cst_12 : f32 to vector<128x128xf32>
    %28 = arith.select %26, %18, %27 : vector<128x128xi1>, vector<128x128xf32>
    %cst_13 = arith.constant 1.000000e+00 : f32
    %29 = vector.broadcast %cst_13 : f32 to vector<128x128xf32>
    %30 = arith.addf %29, %18 : vector<128x128xf32>
    %31 = arith.divf %28, %30 : vector<128x128xf32>
    %cst_14 = arith.constant 2.500000e-01 : f32
    %32 = vector.broadcast %cst_14 : f32 to vector<128x128xf32>
    %33 = arith.mulf %32, %7 : vector<128x128xf32>
    %cst_15 = arith.constant 1.000000e+00 : f32
    %34 = vector.broadcast %cst_15 : f32 to vector<128x128xf32>
    %35 = arith.subf %34, %7 : vector<128x128xf32>
    %cst_16 = arith.constant 7.500000e-01 : f32
    %36 = vector.broadcast %cst_16 : f32 to vector<128x128xf32>
    %37 = arith.mulf %36, %35 : vector<128x128xf32>
    %38 = arith.addf %33, %37 : vector<128x128xf32>
    %39 = arith.mulf %38, %24 : vector<128x128xf32>
    %40 = arith.mulf %39, %31 : vector<128x128xf32>
    %41 = arith.mulf %40, %31 : vector<128x128xf32>
    %42 = arith.mulf %41, %9 : vector<128x128xf32>
    %43 = vector.shape_cast %42 : vector<128x128xf32> to vector<1x128x128xf32>
    %cst_17 = arith.constant dense<0.000000e+00> : vector<1xf32>
    %44 = vector.multi_reduction <add>, %43, %cst_17 [1, 2] : vector<1x128x128xf32> to vector<1xf32>
    %45 = vector.shape_cast %44 : vector<1xf32> to vector<1x1x1xf32>
    %46 = vector.extract %45[0, 0, 0] : f32 from vector<1x1x1xf32>
    %47 = vector.shape_cast %9 : vector<128x128xf32> to vector<1x128x128xf32>
    %cst_18 = arith.constant dense<0.000000e+00> : vector<1xf32>
    %48 = vector.multi_reduction <add>, %47, %cst_18 [1, 2] : vector<1x128x128xf32> to vector<1xf32>
    %49 = vector.shape_cast %48 : vector<1xf32> to vector<1x1x1xf32>
    %50 = vector.extract %49[0, 0, 0] : f32 from vector<1x1x1xf32>
    %c0_19 = arith.constant 0 : index
    %c0_20 = arith.constant 0 : index
    %51 = vector.load %arg3[%c0_19, %c0_20] : memref<224x128xf32, #tpu.memory_space<vmem>>, vector<224x128xf32>
    %c0_21 = arith.constant 0 : index
    %c0_22 = arith.constant 0 : index
    %52 = vector.load %arg4[%c0_21, %c0_22] : memref<224x128xf32, #tpu.memory_space<vmem>>, vector<224x128xf32>
    %53 = arith.subf %51, %52 : vector<224x128xf32>
    %54 = math.absf %53 : vector<224x128xf32>
    %cst_23 = arith.constant 1.000000e+00 : f32
    %55 = vector.broadcast %cst_23 : f32 to vector<224x128xf32>
    %56 = arith.cmpf olt, %54, %55 : vector<224x128xf32>
    %cst_24 = arith.constant 5.000000e-01 : f32
    %57 = vector.broadcast %cst_24 : f32 to vector<224x128xf32>
    %58 = arith.mulf %57, %53 : vector<224x128xf32>
    %59 = arith.mulf %58, %53 : vector<224x128xf32>
    %cst_25 = arith.constant 5.000000e-01 : f32
    %60 = vector.broadcast %cst_25 : f32 to vector<224x128xf32>
    %61 = arith.subf %54, %60 : vector<224x128xf32>
    %62 = arith.select %56, %59, %61 : vector<224x128xi1>, vector<224x128xf32>
    %c0_26 = arith.constant 0 : index
    %c0_27 = arith.constant 0 : index
    %63 = vector.load %arg5[%c0_26, %c0_27] : memref<224x128xi8, #tpu.memory_space<vmem>>, vector<224x128xi8>
    %64 = arith.sitofp %63 : vector<224x128xi8> to vector<224x128xf32>
    %cst_28 = arith.constant 2.000000e+00 : f32
    %65 = vector.broadcast %cst_28 : f32 to vector<224x128xf32>
    %66 = arith.cmpf oeq, %64, %65 : vector<224x128xf32>
    %cst_29 = arith.constant 1.000000e+00 : f32
    %67 = vector.broadcast %cst_29 : f32 to vector<224x128xf32>
    %68 = arith.minimumf %64, %67 : vector<224x128xf32>
    %cst_30 = arith.constant 0.954929649 : f32
    %69 = vector.broadcast %cst_30 : f32 to vector<224x128xf32>
    %70 = arith.select %66, %69, %68 : vector<224x128xi1>, vector<224x128xf32>
    %71 = arith.mulf %62, %70 : vector<224x128xf32>
    %cst_31 = arith.constant 3.000000e+00 : f32
    %72 = vector.broadcast %cst_31 : f32 to vector<224x128xf32>
    %73 = arith.cmpf oeq, %64, %72 : vector<224x128xf32>
    %cst_32 = arith.constant 1.000000e+00 : f32
    %cst_33 = arith.constant 0.000000e+00 : f32
    %74 = vector.broadcast %cst_32 : f32 to vector<224x128xf32>
    %75 = vector.broadcast %cst_33 : f32 to vector<224x128xf32>
    %76 = arith.select %73, %74, %75 : vector<224x128xi1>, vector<224x128xf32>
    %77 = vector.shape_cast %71 : vector<224x128xf32> to vector<1x224x128xf32>
    %cst_34 = arith.constant dense<0.000000e+00> : vector<1xf32>
    %78 = vector.multi_reduction <add>, %77, %cst_34 [1, 2] : vector<1x224x128xf32> to vector<1xf32>
    %79 = vector.shape_cast %78 : vector<1xf32> to vector<1x1x1xf32>
    %80 = vector.extract %79[0, 0, 0] : f32 from vector<1x1x1xf32>
    %81 = vector.shape_cast %76 : vector<224x128xf32> to vector<1x224x128xf32>
    %cst_35 = arith.constant dense<0.000000e+00> : vector<1xf32>
    %82 = vector.multi_reduction <add>, %81, %cst_35 [1, 2] : vector<1x224x128xf32> to vector<1xf32>
    %83 = vector.shape_cast %82 : vector<1xf32> to vector<1x1x1xf32>
    %84 = vector.extract %83[0, 0, 0] : f32 from vector<1x1x1xf32>
    %85 = tpu.iota {dimensions = array<i32: 0>} : vector<8x128xi32>
    %c0_i32 = arith.constant 0 : i32
    %86 = vector.broadcast %c0_i32 : i32 to vector<8x128xi32>
    %87 = arith.cmpi eq, %85, %86 : vector<8x128xi32>
    %cst_36 = arith.constant 0.000000e+00 : f32
    %88 = vector.broadcast %46 : f32 to vector<8x128xf32>
    %89 = vector.broadcast %cst_36 : f32 to vector<8x128xf32>
    %90 = arith.select %87, %88, %89 : vector<8x128xi1>, vector<8x128xf32>
    %c1_i32 = arith.constant 1 : i32
    %91 = vector.broadcast %c1_i32 : i32 to vector<8x128xi32>
    %92 = arith.cmpi eq, %85, %91 : vector<8x128xi32>
    %cst_37 = arith.constant 0.000000e+00 : f32
    %93 = vector.broadcast %50 : f32 to vector<8x128xf32>
    %94 = vector.broadcast %cst_37 : f32 to vector<8x128xf32>
    %95 = arith.select %92, %93, %94 : vector<8x128xi1>, vector<8x128xf32>
    %96 = arith.addf %90, %95 : vector<8x128xf32>
    %c2_i32 = arith.constant 2 : i32
    %97 = vector.broadcast %c2_i32 : i32 to vector<8x128xi32>
    %98 = arith.cmpi eq, %85, %97 : vector<8x128xi32>
    %cst_38 = arith.constant 0.000000e+00 : f32
    %99 = vector.broadcast %80 : f32 to vector<8x128xf32>
    %100 = vector.broadcast %cst_38 : f32 to vector<8x128xf32>
    %101 = arith.select %98, %99, %100 : vector<8x128xi1>, vector<8x128xf32>
    %102 = arith.addf %96, %101 : vector<8x128xf32>
    %c3_i32 = arith.constant 3 : i32
    %103 = vector.broadcast %c3_i32 : i32 to vector<8x128xi32>
    %104 = arith.cmpi eq, %85, %103 : vector<8x128xi32>
    %cst_39 = arith.constant 0.000000e+00 : f32
    %105 = vector.broadcast %84 : f32 to vector<8x128xf32>
    %106 = vector.broadcast %cst_39 : f32 to vector<8x128xf32>
    %107 = arith.select %104, %105, %106 : vector<8x128xi1>, vector<8x128xf32>
    %108 = arith.addf %102, %107 : vector<8x128xf32>
    %c0_40 = arith.constant 0 : index
    %c0_41 = arith.constant 0 : index
    %109 = vector.load %arg6[%c0_40, %c0_41] : memref<8x128xf32, #tpu.memory_space<vmem>>, vector<8x128xf32>
    tpu.vector_store %arg6[%c0_40, %c0_41], %108 {strides = array<i32>} : memref<8x128xf32, #tpu.memory_space<vmem>>, vector<8x128xf32>,
    return
  }
  func.func @transform_0(%arg0: i32) -> (i32, i32) {
    %c0_i32 = arith.constant 0 : i32
    %c0_i32_0 = arith.constant 0 : i32
    return %arg0, %c0_i32 : i32, i32
  }
  func.func @transform_1(%arg0: i32) -> (i32, i32) {
    %c0_i32 = arith.constant 0 : i32
    %c0_i32_0 = arith.constant 0 : i32
    return %arg0, %c0_i32 : i32, i32
  }
  func.func @transform_2(%arg0: i32) -> (i32, i32) {
    %c0_i32 = arith.constant 0 : i32
    %c0_i32_0 = arith.constant 0 : i32
    return %arg0, %c0_i32 : i32, i32
  }
  func.func @transform_3(%arg0: i32) -> (i32, i32) {
    %c0_i32 = arith.constant 0 : i32
    %c0_i32_0 = arith.constant 0 : i32
    return %arg0, %c0_i32 : i32, i32
  }
  func.func @transform_4(%arg0: i32) -> (i32, i32) {
    %c0_i32 = arith.constant 0 : i32
    %c0_i32_0 = arith.constant 0 : i32
    return %arg0, %c0_i32 : i32, i32
  }
  func.func @transform_5(%arg0: i32) -> (i32, i32) {
    %c0_i32 = arith.constant 0 : i32
    %c0_i32_0 = arith.constant 0 : i32
    return %arg0, %c0_i32 : i32, i32
  }
}

</mosaic_0001>

<bundles_post_ra>
// kernel: proposal_loss.1
= control target key start
LH: loop header
LB: loop body
LE: loop exit
PB: predicated region body
PF: predicated region fallthrough
CT: control target
= control target key end

     0   :  { %s3536_s2 = inlined_call_operand.vmem [shape: f32[224,128], index: 2, kind: input, shape index: {}]   ;;  %s3537_s3 = inlined_call_operand.vmem [shape: f32[224,128], index: 3, kind: input, shape index: {}]   ;;  %s3538_s4 = inlined_call_operand.vmem [shape: s8[224,128], index: 4, kind: input, shape index: {}]   ;;  %s3539_s1 = inlined_call_operand.vmem [shape: s8[128,128], index: 1, kind: input, shape index: {}]   ;;  %s3540_s0 = inlined_call_operand.vmem [shape: f32[128,128], index: 0, kind: input, shape index: {}]   ;;  %s3541_s5 = inlined_call_operand.vmem [shape: f32[8,128], index: 5, kind: output, shape index: {}]  }
   0x1   :  { %v680_v0 = vld [vmem:[%s3536_s2] sm:$0xff]  ;;  %v681_v1 = vld [vmem:[%s3536_s2 + $0x8] sm:$0xff]  ;;  %v682_v2 = vld [vmem:[%s3536_s2 + $0x10] sm:$0xff] }
   0x2   :  { %v708_v3 = vld [vmem:[%s3537_s3] sm:$0xff]  ;;  %v683_v4 = vld [vmem:[%s3536_s2 + $0x18] sm:$0xff]  ;;  %v709_v6 = vld [vmem:[%s3537_s3 + $0x8] sm:$0xff] }
   0x3   :  { %v684_v5 = vld [vmem:[%s3536_s2 + $0x20] sm:$0xff]  ;;  %v685_v7 = vld [vmem:[%s3536_s2 + $0x28] sm:$0xff]  ;;  %v686_v8 = vld [vmem:[%s3536_s2 + $0x30] sm:$0xff]  ;;  %v1485_v16 = vsub.f32 %v680_v0, %v708_v3  ;;  %v1505_v23 = vsub.f32 %v681_v1, %v709_v6 }
   0x4   :  { %v687_v9 = vld [vmem:[%s3536_s2 + $0x38] sm:$0xff]  ;;  %v710_v10 = vld [vmem:[%s3537_s3 + $0x10] sm:$0xff]  ;;  %v688_v11 = vld [vmem:[%s3536_s2 + $0x40] sm:$0xff] }
   0x5   :  { %v689_v12 = vld [vmem:[%s3536_s2 + $0x48] sm:$0xff]  ;;  %v690_v13 = vld [vmem:[%s3536_s2 + $0x50] sm:$0xff]  ;;  %v711_v14 = vld [vmem:[%s3537_s3 + $0x18] sm:$0xff]  ;;  %v1525_v30 = vsub.f32 %v682_v2, %v710_v10 }
   0x6   :  { %v712_v15 = vld [vmem:[%s3537_s3 + $0x20] sm:$0xff]  ;;  %v691_v17 = vld [vmem:[%s3536_s2 + $0x58] sm:$0xff]  ;;  %v693_v19 = vld [vmem:[%s3536_s2 + $0x68] sm:$0xff]  ;;  %v1545_v37 = vsub.f32 %v683_v4, %v711_v14 }
   0x7   :  { %v692_v18 = vld [vmem:[%s3536_s2 + $0x60] sm:$0xff]  ;;  %v713_v20 = vld [vmem:[%s3537_s3 + $0x28] sm:$0xff]  ;;  %v714_v21 = vld [vmem:[%s3537_s3 + $0x30] sm:$0xff]  ;;  %v1547_v38 = vsub.f32 %v684_v5, %v712_v15 }
   0x8   :  { %v715_v22 = vld [vmem:[%s3537_s3 + $0x38] sm:$0xff]  ;;  %v694_v24 = vld [vmem:[%s3536_s2 + $0x70] sm:$0xff]  ;;  %v696_v26 = vld [vmem:[%s3536_s2 + $0x80] sm:$0xff]  ;;  %v1567_v45 = vsub.f32 %v685_v7, %v713_v20  ;;  %v1569_v46 = vsub.f32 %v686_v8, %v714_v21 }
   0x9   :  { %v695_v25 = vld [vmem:[%s3536_s2 + $0x78] sm:$0xff]  ;;  %v716_v27 = vld [vmem:[%s3537_s3 + $0x40] sm:$0xff]  ;;  %v717_v28 = vld [vmem:[%s3537_s3 + $0x48] sm:$0xff]  ;;  %v1571_v47 = vsub.f32 %v687_v9, %v715_v22 }
   0xa   :  { %v718_v29 = vld [vmem:[%s3537_s3 + $0x50] sm:$0xff]  ;;  %v697_v31 = vld [vmem:[%s3536_s2 + $0x88] sm:$0xff]  ;;  %v699_v33 = vld [vmem:[%s3536_s2 + $0x98] sm:$0xff]  ;;  %v1592_v55 = vsub.f32 %v688_v11, %v716_v27  ;;  %v1594_v56 = vsub.f32 %v689_v12, %v717_v28 }
   0xb   :  { %v698_v32 = vld [vmem:[%s3536_s2 + $0x90] sm:$0xff]  ;;  %v719_v34 = vld [vmem:[%s3537_s3 + $0x58] sm:$0xff]  ;;  %v720_v35 = vld [vmem:[%s3537_s3 + $0x60] sm:$0xff]  ;;  %v1596_v57 = vsub.f32 %v690_v13, %v718_v29 }
   0xc   :  { %v721_v36 = vld [vmem:[%s3537_s3 + $0x68] sm:$0xff]  ;;  %v700_v39 = vld [vmem:[%s3536_s2 + $0xa0] sm:$0xff]  ;;  %v702_v41 = vld [vmem:[%s3536_s2 + $0xb0] sm:$0xff]  ;;  %v1611_v63 = vsub.f32 %v691_v17, %v719_v34  ;;  %v1613_v0 = vsub.f32 %v692_v18, %v720_v35 }
   0xd   :  { %v701_v40 = vld [vmem:[%s3536_s2 + $0xa8] sm:$0xff]  ;;  %v722_v42 = vld [vmem:[%s3537_s3 + $0x70] sm:$0xff]  ;;  %v723_v43 = vld [vmem:[%s3537_s3 + $0x78] sm:$0xff]  ;;  %v1615_v1 = vsub.f32 %v693_v19, %v721_v36 }
   0xe   :  { %v724_v44 = vld [vmem:[%s3537_s3 + $0x80] sm:$0xff]  ;;  %v703_v49 = vld [vmem:[%s3536_s2 + $0xb8] sm:$0xff]  ;;  %v705_v51 = vld [vmem:[%s3536_s2 + $0xc8] sm:$0xff]  ;;  %v1627_v6 = vsub.f32 %v694_v24, %v722_v42  ;;  %v1629_v7 = vsub.f32 %v695_v25, %v723_v43  ;;  %v822_v43 = vmul.f32 0.5, %v1525_v30 }
   0xf   :  { %v704_v50 = vld [vmem:[%s3536_s2 + $0xc0] sm:$0xff]  ;;  %v725_v52 = vld [vmem:[%s3537_s3 + $0x88] sm:$0xff]  ;;  %v726_v53 = vld [vmem:[%s3537_s3 + $0x90] sm:$0xff]  ;;  %v1631_v8 = vsub.f32 %v696_v26, %v724_v44 }
  0x10   :  { %v727_v54 = vld [vmem:[%s3537_s3 + $0x98] sm:$0xff]  ;;  %v706_v59 = vld [vmem:[%s3536_s2 + $0xd0] sm:$0xff]  ;;  %v728_v60 = vld [vmem:[%s3537_s3 + $0xa0] sm:$0xff]  ;;  %v1643_v13 = vsub.f32 %v697_v31, %v725_v52  ;;  %v1645_v14 = vsub.f32 %v698_v32, %v726_v53  ;;  %v834_v53 = vmul.f32 0.5, %v1627_v6  ;;  %v835_v52 = vmul.f32 0.5, %v1629_v7 }
  0x11   :  { %v729_v61 = vld [vmem:[%s3537_s3 + $0xa8] sm:$0xff]  ;;  %v730_v62 = vld [vmem:[%s3537_s3 + $0xb0] sm:$0xff]  ;;  %v731_v3 = vld [vmem:[%s3537_s3 + $0xb8] sm:$0xff]  ;;  %v1647_v15 = vsub.f32 %v699_v33, %v727_v54  ;;  %v1650_v18 = vsub.f32 %v700_v39, %v728_v60  ;;  %v823_v39 = vmul.f32 0.5, %v1545_v37  ;;  %v832_v60 = vmul.f32 0.5, %v1613_v0 }
  0x12   :  { %v732_v4 = vld [vmem:[%s3537_s3 + $0xc0] sm:$0xff]  ;;  %v733_v5 = vld [vmem:[%s3537_s3 + $0xc8] sm:$0xff]  ;;  %v707_v10 = vld [vmem:[%s3536_s2 + $0xd8] sm:$0xff]  ;;  %v1652_v19 = vsub.f32 %v701_v40, %v729_v61  ;;  %v1654_v20 = vsub.f32 %v702_v41, %v730_v62  ;;  %v1662_v24 = vsub.f32 %v703_v49, %v731_v3  ;;  %v824_v3 = vmul.f32 0.5, %v1547_v38 }
  0x13   :  { %v734_v11 = vld [vmem:[%s3537_s3 + $0xd0] sm:$0xff]  ;;  %v735_v12 = vld [vmem:[%s3537_s3 + $0xd8] sm:$0xff]  ;;  %v1660_v22 = vld [vmem:[%s3538_s4] sm:$0xff]  ;;  %v1664_v25 = vsub.f32 %v704_v50, %v732_v4  ;;  %v1666_v26 = vsub.f32 %v705_v51, %v733_v5  ;;  %v821_v51 = vmul.f32 0.5, %v1505_v23  ;;  %v825_v4 = vmul.f32 0.5, %v1567_v45 }
  0x14   :  { %3774 = vst [vmem:[#allocation2_spill] sm:$0xff] %v1660_v22  ;;  %v1669_v28 = vsub.f32 %v706_v59, %v734_v11  ;;  %v1671_v29 = vsub.f32 %v707_v10, %v735_v12  ;;  %v1678_v33 = vld [vmem:[%s3538_s4 + $0x8] sm:$0xff]  ;;  %v820_v59 = vmul.f32 0.5, %v1485_v16  ;;  %v826_v5 = vmul.f32 0.5, %v1569_v46 }
  0x15   :  { %3775 = vst [vmem:[#allocation3_spill] sm:$0xff] %v1678_v33  ;;  %v827_v10 = vmul.f32 0.5, %v1571_v47  ;;  %v828_v11 = vmul.f32 0.5, %v1592_v55  ;;  %v829_v12 = vmul.f32 0.5, %v1594_v56  ;;  %v830_v62 = vmul.f32 0.5, %v1596_v57 }
  0x16   :  { %v831_v61 = vmul.f32 0.5, %v1611_v63  ;;  %v833_v54 = vmul.f32 0.5, %v1615_v1  ;;  %v836_v50 = vmul.f32 0.5, %v1631_v8  ;;  %v837_v49 = vmul.f32 0.5, %v1643_v13 }
  0x17   :  { %v838_v44 = vmul.f32 0.5, %v1645_v14  ;;  %v839_v42 = vmul.f32 0.5, %v1647_v15  ;;  %v840_v41 = vmul.f32 0.5, %v1650_v18  ;;  %v841_v40 = vmul.f32 0.5, %v1652_v19 }
  0x18   :  { %v842_v36 = vmul.f32 0.5, %v1654_v20  ;;  %v843_v35 = vmul.f32 0.5, %v1662_v24  ;;  %v844_v34 = vmul.f32 0.5, %v1664_v25  ;;  %v845_v32 = vmul.f32 0.5, %v1666_v26 }
  0x19   :  { %v846_v31 = vmul.f32 0.5, %v1669_v28  ;;  %v847_v27 = vmul.f32 0.5, %v1671_v29  ;;  %v1734_v21 = vmul.f32 %v820_v59, %v1485_v16  ;;  %v1737_v17 = vmul.f32 %v821_v51, %v1505_v23 }
  0x1a   :  { %v1740_v9 = vmul.f32 %v822_v43, %v1525_v30  ;;  %v1743_v2 = vmul.f32 %v823_v39, %v1545_v37  ;;  %v1746_v58 = vmul.f32 %v824_v3, %v1547_v38  ;;  %v1749_v48 = vmul.f32 %v825_v4, %v1567_v45 }
  0x1b   :  { %v1752_v22 = vmul.f32 %v826_v5, %v1569_v46  ;;  %v1755_v59 = vmul.f32 %v827_v10, %v1571_v47  ;;  %v1758_v51 = vmul.f32 %v828_v11, %v1592_v55  ;;  %v1761_v43 = vmul.f32 %v829_v12, %v1594_v56 }
  0x1c   :  { %v1764_v39 = vmul.f32 %v830_v62, %v1596_v57  ;;  %v3780_v3 = vand.u32 2147483647, %v1485_v16  ;;  %v3783_v5 = vand.u32 2147483647, %v1505_v23  ;;  %v3786_v11 = vand.u32 2147483647, %v1525_v30 }
  0x1d   :  { %3776 = vst [vmem:[#allocation4_spill] sm:$0xff] %v1755_v59  ;;  %3777 = vst [vmem:[#allocation5_spill] sm:$0xff] %v1758_v51  ;;  %v1785_v62 = vmul.f32 %v831_v61, %v1611_v63  ;;  %v1791_v33 = vmul.f32 %v833_v54, %v1615_v1  ;;  %v4006_v4 = vand.u32 2147483647, %v1666_v26 }
  0x1e   :  { %3778 = vst [vmem:[#allocation6_spill] sm:$0xff] %v1761_v43  ;;  %3779 = vst [vmem:[#allocation7_spill] sm:$0xff] %v1764_v39  ;;  %vm1768_vm0 = vcmp.lt.f32.partialorder %v3780_v3, 1.0  ;;  %vm1774_vm1 = vcmp.lt.f32.partialorder %v3783_v5, 1.0  ;;  %vm1780_vm2 = vcmp.lt.f32.partialorder %v3786_v11, 1.0  ;;  %v1788_v3 = vmul.f32 %v832_v60, %v1613_v0 }
  0x1f   :  { %3789 = vst [vmem:[#allocation8_spill] sm:$0xff] %v1785_v62  ;;  %3791 = vst [vmem:[#allocation10_spill] sm:$0xff] %v1791_v33  ;;  %v1794_v5 = vmul.f32 %v834_v53, %v1627_v6  ;;  %v3793_v39 = vand.u32 2147483647, %v1545_v37  ;;  %v3796_v11 = vand.u32 2147483647, %v1547_v38  ;;  %v1827_v33 = vmul.f32 %v837_v49, %v1643_v13 }
  0x20   :  { %3790 = vst [vmem:[#allocation9_spill] sm:$0xff] %v1788_v3  ;;  %v3799_v60 = vand.u32 2147483647, %v1567_v45  ;;  %v3802_v53 = vand.u32 2147483647, %v1569_v46  ;;  %v3810_v62 = vmov 0 }
  0x21   :  { %3792 = vst [vmem:[#allocation11_spill] sm:$0xff] %v1794_v5  ;;  %vm1798_vm3 = vcmp.lt.f32.partialorder %v3793_v39, 1.0  ;;  %vm1804_vm4 = vcmp.lt.f32.partialorder %v3796_v11, 1.0  ;;  %v3803_v5 = vmov 0  ;;  %v1821_v39 = vmul.f32 %v835_v52, %v1629_v7  ;;  %3807 = vst [vmem:[#allocation14_spill] sm:$0xff] %v1827_v33 }
  0x22   :  { %vm1810_vm5 = vcmp.lt.f32.partialorder %v3799_v60, 1.0  ;;  %vm1816_vm6 = vcmp.lt.f32.partialorder %v3802_v53, 1.0  ;;  %v1824_v11 = vmul.f32 %v836_v50, %v1631_v8  ;;  %v1830_v60 = vmul.f32 %v838_v44, %v1645_v14 }
  0x23   :  { %v3804_v5 = vsel %vm1816_vm6, 4294967295, %v3803_v5  ;;  %3805 = vst [vmem:[#allocation12_spill] sm:$0xff] %v1821_v39  ;;  %v3809_v3 = vand.u32 2147483647, %v1571_v47  ;;  %v3813_v53 = vand.u32 2147483647, %v1592_v55  ;;  %v1863_v33 = vmul.f32 %v841_v40, %v1652_v19 }
  0x24   :  { %3806 = vst [vmem:[#allocation13_spill] sm:$0xff] %v1824_v11  ;;  %3808 = vst [vmem:[#allocation15_spill] sm:$0xff] %v1830_v60  ;;  %v3814_v52 = vmov 0  ;;  %v3817_v50 = vand.u32 2147483647, %v1594_v56  ;;  %v3818_v49 = vmov 0 }
  0x25   :  { %vm1834_vm7 = vcmp.lt.f32.partialorder %v3809_v3, 1.0  ;;  %vm1840_vm8 = vcmp.lt.f32.partialorder %v3813_v53, 1.0  ;;  %v3821_v44 = vand.u32 2147483647, %v1596_v57  ;;  %v3822_v60 = vmov 0  ;;  %3827 = vst [vmem:[#allocation22_spill] sm:$0xff] %v1863_v33 }
  0x26   :  { %v3811_v62 = vsel %vm1834_vm7, 4294967295, %v3810_v62  ;;  %v3815_v52 = vsel %vm1840_vm8, 4294967295, %v3814_v52  ;;  %vm1846_vm9 = vcmp.lt.f32.partialorder %v3817_v50, 1.0  ;;  %v1857_v3 = vmul.f32 %v839_v42, %v1647_v15 }
  0x27   :  { %3812 = vst [vmem:[#allocation16_spill] sm:$0xff] %v3811_v62  ;;  %3816 = vst [vmem:[#allocation17_spill] sm:$0xff] %v3815_v52  ;;  %v3819_v49 = vsel %vm1846_vm9, 4294967295, %v3818_v49  ;;  %vm1852_vm10 = vcmp.lt.f32.partialorder %v3821_v44, 1.0  ;;  %v1860_v53 = vmul.f32 %v840_v41, %v1650_v18  ;;  %v1866_v50 = vmul.f32 %v842_v36, %v1654_v20 }
  0x28   :  { %3820 = vst [vmem:[#allocation18_spill] sm:$0xff] %v3819_v49  ;;  %v3823_v60 = vsel %vm1852_vm10, 4294967295, %v3822_v60  ;;  %3825 = vst [vmem:[#allocation20_spill] sm:$0xff] %v1857_v3  ;;  %v3829_v11 = vand.u32 2147483647, %v1611_v63  ;;  %v3830_v39 = vmov 0  ;;  %v1899_v33 = vmul.f32 %v845_v32, %v1666_v26 }
  0x29   :  { %3824 = vst [vmem:[#allocation19_spill] sm:$0xff] %v3823_v60  ;;  %3826 = vst [vmem:[#allocation21_spill] sm:$0xff] %v1860_v53  ;;  %v3833_v44 = vand.u32 2147483647, %v1613_v0  ;;  %v3834_v42 = vmov 0  ;;  %v3838_v40 = vmov 0 }
  0x2a   :  { %3828 = vst [vmem:[#allocation23_spill] sm:$0xff] %v1866_v50  ;;  %vm1870_vm11 = vcmp.lt.f32.partialorder %v3829_v11, 1.0  ;;  %v3837_v41 = vand.u32 2147483647, %v1615_v1  ;;  %v3841_v36 = vand.u32 2147483647, %v1627_v6  ;;  %v1893_v11 = vmul.f32 %v843_v35, %v1662_v24 }
  0x2b   :  { %v3831_v39 = vsel %vm1870_vm11, 4294967295, %v3830_v39  ;;  %vm1876_vm12 = vcmp.lt.f32.partialorder %v3833_v44, 1.0  ;;  %v3842_v50 = vmov 0  ;;  %v1896_v44 = vmul.f32 %v844_v34, %v1664_v25  ;;  %3847 = vst [vmem:[#allocation30_spill] sm:$0xff] %v1899_v33 }
  0x2c   :  { %3832 = vst [vmem:[#allocation24_spill] sm:$0xff] %v3831_v39  ;;  %v3835_v42 = vsel %vm1876_vm12, 4294967295, %v3834_v42  ;;  %vm1882_vm13 = vcmp.lt.f32.partialorder %v3837_v41, 1.0  ;;  %vm1888_vm14 = vcmp.lt.f32.partialorder %v3841_v36, 1.0  ;;  %3845 = vst [vmem:[#allocation28_spill] sm:$0xff] %v1893_v11  ;;  %v1902_v41 = vmul.f32 %v846_v31, %v1669_v28  ;;  %v934_v39 = vld [vmem:[%s3538_s4 + $0x10] sm:$0xff] }
  0x2d   :  { %3836 = vst [vmem:[#allocation25_spill] sm:$0xff] %v3835_v42  ;;  %v3839_v40 = vsel %vm1882_vm13, 4294967295, %v3838_v40  ;;  %v3843_v50 = vsel %vm1888_vm14, 4294967295, %v3842_v50  ;;  %3846 = vst [vmem:[#allocation29_spill] sm:$0xff] %v1896_v44  ;;  %v3849_v53 = vand.u32 2147483647, %v1629_v7 }
  0x2e   :  { %3840 = vst [vmem:[#allocation26_spill] sm:$0xff] %v3839_v40  ;;  %3844 = vst [vmem:[#allocation27_spill] sm:$0xff] %v3843_v50  ;;  %v3850_v3 = vmov 0  ;;  %v3853_v36 = vand.u32 2147483647, %v1631_v8  ;;  %v3854_v35 = vmov 0  ;;  %v947_v50 = vunpack.c.0.s8 %v934_v39 }
  0x2f   :  { %3848 = vst [vmem:[#allocation31_spill] sm:$0xff] %v1902_v41  ;;  %vm1906_vm15 = vcmp.lt.f32.partialorder %v3849_v53, 1.0  ;;  %v3857_v34 = vand.u32 2147483647, %v1643_v13  ;;  %v3858_v32 = vmov 0  ;;  %v3862_v41 = vmov 0 }
  0x30   :  { %v3851_v3 = vsel %vm1906_vm15, 4294967295, %v3850_v3  ;;  %vm1912_vm14 = vcmp.lt.f32.partialorder %v3853_v36, 1.0  ;;  %v3861_v31 = vand.u32 2147483647, %v1645_v14  ;;  %v1929_v53 = vmul.f32 %v847_v27, %v1671_v29 }
  0x31   :  { %3852 = vst [vmem:[#allocation32_spill] sm:$0xff] %v3851_v3  ;;  %v3855_v35 = vsel %vm1912_vm14, 4294967295, %v3854_v35  ;;  %vm1918_vm13 = vcmp.lt.f32.partialorder %v3857_v34, 1.0  ;;  %v3866_v36 = vand.u32 2147483647, %v1485_v16  ;;  %v3874_v16 = vmov 0 }
  0x32   :  { %3856 = vst [vmem:[#allocation33_spill] sm:$0xff] %v3855_v35  ;;  %v3859_v32 = vsel %vm1918_vm13, 4294967295, %v3858_v32  ;;  %vm1924_vm12 = vcmp.lt.f32.partialorder %v3861_v31, 1.0  ;;  %3865 = vst [vmem:[#allocation36_spill] sm:$0xff] %v1929_v53  ;;  %v3867_v44 = vand.u32 2147483647, %v1505_v23  ;;  %v2214_v59 = vcvt.s32.f32 %v947_v50 }
  0x33   :  { %3860 = vst [vmem:[#allocation34_spill] sm:$0xff] %v3859_v32  ;;  %v3863_v41 = vsel %vm1924_vm12, 4294967295, %v3862_v41  ;;  %v1933_v33 = vadd.f32 -0.5, %v3866_v36  ;;  %v3868_v34 = vand.u32 2147483647, %v1525_v30  ;;  %v3870_v35 = vmov 0 }
  0x34   :  { %3864 = vst [vmem:[#allocation35_spill] sm:$0xff] %v3863_v41  ;;  %v1937_v11 = vadd.f32 -0.5, %v3867_v44  ;;  %v3869_v31 = vand.u32 2147483647, %v1647_v15  ;;  %v3873_v27 = vand.u32 2147483647, %v1650_v18 }
  0x35   :  { %v1941_v32 = vadd.f32 -0.5, %v3868_v34  ;;  %v3877_v23 = vand.u32 2147483647, %v1652_v19  ;;  %v3878_v44 = vmov 0  ;;  %v3881_v30 = vand.u32 2147483647, %v1654_v20 }
  0x36   :  { %vm1945_vm13 = vcmp.lt.f32.partialorder %v3869_v31, 1.0  ;;  %vm1951_vm12 = vcmp.lt.f32.partialorder %v3873_v27, 1.0  ;;  %v3882_v36 = vmov 0  ;;  %v3885_v34 = vand.u32 2147483647, %v1545_v37  ;;  %v935_v3 = vld [vmem:[%s3538_s4 + $0x18] sm:$0xff] }
  0x37   :  { %v3871_v35 = vsel %vm1945_vm13, 4294967295, %v3870_v35  ;;  %v3875_v16 = vsel %vm1951_vm12, 4294967295, %v3874_v16  ;;  %vm1957_vm14 = vcmp.lt.f32.partialorder %v3877_v23, 1.0  ;;  %vm1963_vm15 = vcmp.lt.f32.partialorder %v3881_v30, 1.0  ;;  %3981 = vst [vmem:[#allocation69_spill] sm:$0xff] %v2214_v59 }
  0x38   :  { %3872 = vst [vmem:[#allocation37_spill] sm:$0xff] %v3871_v35  ;;  %3876 = vst [vmem:[#allocation38_spill] sm:$0xff] %v3875_v16  ;;  %v3879_v44 = vsel %vm1957_vm14, 4294967295, %v3878_v44  ;;  %v3883_v36 = vsel %vm1963_vm15, 4294967295, %v3882_v36  ;;  %v1969_v31 = vadd.f32 -0.5, %v3885_v34  ;;  %v952_v40 = vunpack.c.1.s8 %v935_v3 }
  0x39   :  { %3880 = vst [vmem:[#allocation39_spill] sm:$0xff] %v3879_v44  ;;  %3884 = vst [vmem:[#allocation40_spill] sm:$0xff] %v3883_v36  ;;  %v3886_v27 = vand.u32 2147483647, %v1547_v38  ;;  %v3887_v16 = vand.u32 2147483647, %v1567_v45 }
  0x3a   :  { %v3888_v44 = vand.u32 2147483647, %v1569_v46  ;;  %v3889_v30 = vand.u32 2147483647, %v1662_v24  ;;  %v3890_v36 = vmov 0  ;;  %vm1003_vm10 = vcmp.eq.f32.partialorder %v2214_v59, 2.0 }
  0x3b   :  { %v1973_v53 = vadd.f32 -0.5, %v3886_v27  ;;  %v1977_v23 = vadd.f32 -0.5, %v3887_v16  ;;  %v3893_v37 = vand.u32 2147483647, %v1571_v47  ;;  %v3895_v38 = vand.u32 2147483647, %v1592_v55 }
  0x3c   :  { %v1981_v35 = vadd.f32 -0.5, %v3888_v44  ;;  %vm1985_vm14 = vcmp.lt.f32.partialorder %v3889_v30, 1.0  ;;  %v3897_v45 = vand.u32 2147483647, %v1594_v56  ;;  %v3899_v46 = vand.u32 2147483647, %v1596_v57 }
  0x3d   :  { %v3891_v36 = vsel %vm1985_vm14, 4294967295, %v3890_v36  ;;  %v1991_v34 = vadd.f32 -0.5, %v3893_v37  ;;  %v1995_v27 = vadd.f32 -0.5, %v3895_v38  ;;  %v3901_v30 = vand.u32 2147483647, %v1611_v63 }
  0x3e   :  { %3892 = vst [vmem:[#allocation41_spill] sm:$0xff] %v3891_v36  ;;  %v1999_v16 = vadd.f32 -0.5, %v3897_v45  ;;  %v2003_v44 = vadd.f32 -0.5, %v3899_v46  ;;  %v3903_v47 = vand.u32 2147483647, %v1613_v0  ;;  %v953_v36 = vunpack.c.2.s8 %v935_v3 }
  0x3f   :  { %3894 = vst [vmem:[#allocation42_spill] sm:$0xff] %v1991_v34  ;;  %3896 = vst [vmem:[#allocation43_spill] sm:$0xff] %v1995_v27  ;;  %v2007_v41 = vadd.f32 -0.5, %v3901_v30  ;;  %v3905_v55 = vand.u32 2147483647, %v1615_v1  ;;  %vm2294_vm9 = vcmp.lt.f32.partialorder %v4006_v4, 1.0 }
  0x40   :  { %3898 = vst [vmem:[#allocation44_spill] sm:$0xff] %v1999_v16  ;;  %3900 = vst [vmem:[#allocation45_spill] sm:$0xff] %v2003_v44  ;;  %v2011_v37 = vadd.f32 -0.5, %v3903_v47  ;;  %v3907_v56 = vand.u32 2147483647, %v1627_v6  ;;  %v949_v16 = vunpack.c.2.s8 %v934_v39  ;;  %v1031_v10 = vmin.f32 %v2214_v59, 1.0 }
  0x41   :  { %3902 = vst [vmem:[#allocation46_spill] sm:$0xff] %v2007_v41  ;;  %v2015_v38 = vadd.f32 -0.5, %v3905_v55  ;;  %v3909_v57 = vand.u32 2147483647, %v1629_v7  ;;  %v3911_v63 = vand.u32 2147483647, %v1631_v8 }
  0x42   :  { %3904 = vst [vmem:[#allocation47_spill] sm:$0xff] %v2011_v37  ;;  %v2019_v45 = vadd.f32 -0.5, %v3907_v56  ;;  %v3913_v0 = vand.u32 2147483647, %v1643_v13  ;;  %v3915_v1 = vand.u32 2147483647, %v1645_v14  ;;  %v2218_v62 = vcvt.s32.f32 %v949_v16 }
  0x43   :  { %3906 = vst [vmem:[#allocation48_spill] sm:$0xff] %v2015_v38  ;;  %v2023_v46 = vadd.f32 -0.5, %v3909_v57  ;;  %v2027_v30 = vadd.f32 -0.5, %v3911_v63  ;;  %v3917_v6 = vand.u32 2147483647, %v1647_v15  ;;  %v937_v38 = vld [vmem:[%s3538_s4 + $0x28] sm:$0xff] }
  0x44   :  { %3908 = vst [vmem:[#allocation49_spill] sm:$0xff] %v2019_v45  ;;  %v2031_v47 = vadd.f32 -0.5, %v3913_v0  ;;  %v2035_v55 = vadd.f32 -0.5, %v3915_v1  ;;  %v3919_v7 = vand.u32 2147483647, %v1650_v18  ;;  %v962_v27 = vunpack.c.3.s8 %v937_v38  ;;  %3983 = vst [vmem:[#allocation71_spill] sm:$0xff] %v2218_v62 }
  0x45   :  { %3910 = vst [vmem:[#allocation50_spill] sm:$0xff] %v2023_v46  ;;  %3912 = vst [vmem:[#allocation51_spill] sm:$0xff] %v2027_v30  ;;  %v2039_v56 = vadd.f32 -0.5, %v3917_v6  ;;  %v3921_v8 = vand.u32 2147483647, %v1652_v19  ;;  %v936_v46 = vld [vmem:[%s3538_s4 + $0x20] sm:$0xff]  ;;  %v954_v30 = vunpack.c.3.s8 %v935_v3 }
  0x46   :  { %3914 = vst [vmem:[#allocation52_spill] sm:$0xff] %v2031_v47  ;;  %3916 = vst [vmem:[#allocation53_spill] sm:$0xff] %v2035_v55  ;;  %v2043_v57 = vadd.f32 -0.5, %v3919_v7  ;;  %v3923_v13 = vand.u32 2147483647, %v1654_v20  ;;  %v3965_v47 = vld [vmem:[#allocation3_spill] sm:$0xff]  ;;  %v950_v55 = vunpack.c.3.s8 %v934_v39  ;;  %v956_v37 = vunpack.c.1.s8 %v936_v46 }
  0x47   :  { %3918 = vst [vmem:[#allocation54_spill] sm:$0xff] %v2039_v56  ;;  %v2047_v63 = vadd.f32 -0.5, %v3921_v8  ;;  %v3925_v14 = vand.u32 2147483647, %v1662_v24  ;;  %v3927_v15 = vand.u32 2147483647, %v1664_v25  ;;  %v945_v45 = vunpack.c.2.s8 %v3965_v47 }
  0x48   :  { %3920 = vst [vmem:[#allocation55_spill] sm:$0xff] %v2043_v57  ;;  %v2051_v0 = vadd.f32 -0.5, %v3923_v13  ;;  %v3929_v18 = vand.u32 2147483647, %v1666_v26  ;;  %v3931_v19 = vand.u32 2147483647, %v1669_v28  ;;  %v951_v57 = vunpack.c.0.s8 %v935_v3 }
  0x49   :  { %3922 = vst [vmem:[#allocation56_spill] sm:$0xff] %v2047_v63  ;;  %v2055_v1 = vadd.f32 -0.5, %v3925_v14  ;;  %v2059_v6 = vadd.f32 -0.5, %v3927_v15  ;;  %v3933_v20 = vand.u32 2147483647, %v1671_v29  ;;  %v946_v63 = vunpack.c.3.s8 %v3965_v47  ;;  %v938_v15 = vld [vmem:[%s3538_s4 + $0x30] sm:$0xff] }
  0x4a   :  { %3924 = vst [vmem:[#allocation57_spill] sm:$0xff] %v2051_v0  ;;  %v2063_v7 = vadd.f32 -0.5, %v3929_v18  ;;  %v2067_v8 = vadd.f32 -0.5, %v3931_v19  ;;  %v948_v0 = vunpack.c.1.s8 %v934_v39  ;;  %v957_v56 = vunpack.c.2.s8 %v936_v46  ;;  %v3966_v24 = vld [vmem:[#allocation2_spill] sm:$0xff]  ;;  %v4053_v12 = vld [vmem:[#allocation44_spill] sm:$0xff] }
  0x4b   :  { %3926 = vst [vmem:[#allocation58_spill] sm:$0xff] %v2055_v1  ;;  %3928 = vst [vmem:[#allocation59_spill] sm:$0xff] %v2059_v6  ;;  %v2071_v13 = vadd.f32 -0.5, %v3933_v20  ;;  %v955_v1 = vunpack.c.0.s8 %v936_v46  ;;  %v958_v42 = vunpack.c.3.s8 %v936_v46  ;;  %v959_v20 = vunpack.c.0.s8 %v937_v38 }
  0x4c   :  { %3930 = vst [vmem:[#allocation60_spill] sm:$0xff] %v2063_v7  ;;  %3932 = vst [vmem:[#allocation61_spill] sm:$0xff] %v2067_v8  ;;  %v960_v19 = vunpack.c.1.s8 %v937_v38  ;;  %v961_v18 = vunpack.c.2.s8 %v937_v38  ;;  %v963_v8 = vunpack.c.0.s8 %v938_v15  ;;  %v964_v41 = vunpack.c.1.s8 %v938_v15 }
  0x4d   :  { %3934 = vst [vmem:[#allocation62_spill] sm:$0xff] %v2071_v13  ;;  %v965_v13 = vunpack.c.2.s8 %v938_v15  ;;  %v966_v44 = vunpack.c.3.s8 %v938_v15  ;;  %v3967_v60 = vunpack.c.0.s8 %v3966_v24  ;;  %v3969_v39 = vunpack.c.1.s8 %v3966_v24 }
  0x4e   :  { %v3971_v3 = vunpack.c.2.s8 %v3966_v24  ;;  %v3973_v46 = vunpack.c.3.s8 %v3966_v24  ;;  %v3975_v38 = vunpack.c.0.s8 %v3965_v47  ;;  %v3977_v15 = vunpack.c.1.s8 %v3965_v47 }
  0x4f   :  { %v2188_v14 = vcvt.s32.f32 %v3967_v60  ;;  %v2192_v49 = vcvt.s32.f32 %v3969_v39  ;;  %v2210_v34 = vcvt.s32.f32 %v945_v45  ;;  %v2212_v39 = vcvt.s32.f32 %v946_v63 }
  0x50   :  { %v2196_v51 = vcvt.s32.f32 %v3971_v3  ;;  %v2200_v52 = vcvt.s32.f32 %v3973_v46  ;;  %v2204_v7 = vcvt.s32.f32 %v3975_v38  ;;  %v2208_v60 = vcvt.s32.f32 %v3977_v15 }
  0x51   :  { %3968 = vst [vmem:[#allocation3_spill] sm:$0xff] %v2188_v14  ;;  %3970 = vst [vmem:[#allocation2_spill] sm:$0xff] %v2192_v49  ;;  %v2216_v3 = vcvt.s32.f32 %v948_v0  ;;  %v2220_v24 = vcvt.s32.f32 %v950_v55  ;;  %v2222_v46 = vcvt.s32.f32 %v951_v57  ;;  %v2224_v38 = vcvt.s32.f32 %v952_v40 }
  0x52   :  { %3972 = vst [vmem:[#allocation63_spill] sm:$0xff] %v2196_v51  ;;  %3974 = vst [vmem:[#allocation64_spill] sm:$0xff] %v2200_v52  ;;  %v2226_v6 = vcvt.s32.f32 %v953_v36  ;;  %v2228_v47 = vcvt.s32.f32 %v954_v30  ;;  %v2230_v45 = vcvt.s32.f32 %v955_v1  ;;  %v2232_v63 = vcvt.s32.f32 %v956_v37 }
  0x53   :  { %3976 = vst [vmem:[#allocation65_spill] sm:$0xff] %v2204_v7  ;;  %3978 = vst [vmem:[#allocation66_spill] sm:$0xff] %v2208_v60  ;;  %v2234_v50 = vcvt.s32.f32 %v957_v56  ;;  %v1023_v0 = vmin.f32 %v2188_v14, 1.0  ;;  %v1024_v16 = vmin.f32 %v2192_v49, 1.0  ;;  %v2238_v55 = vcvt.s32.f32 %v958_v42 }
  0x54   :  { %3979 = vst [vmem:[#allocation67_spill] sm:$0xff] %v2210_v34  ;;  %3980 = vst [vmem:[#allocation68_spill] sm:$0xff] %v2212_v39  ;;  %v2240_v57 = vcvt.s32.f32 %v959_v20  ;;  %vm995_vm14 = vcmp.eq.f32.partialorder %v2188_v14, 2.0  ;;  %vm996_vm15 = vcmp.eq.f32.partialorder %v2192_v49, 2.0  ;;  %v2244_v40 = vcvt.s32.f32 %v960_v19 }
  0x55   :  { %3982 = vst [vmem:[#allocation70_spill] sm:$0xff] %v2216_v3  ;;  %3984 = vst [vmem:[#allocation72_spill] sm:$0xff] %v2220_v24  ;;  %v2246_v36 = vcvt.s32.f32 %v961_v18  ;;  %v2248_v37 = vcvt.s32.f32 %v962_v27  ;;  %v1025_v30 = vmin.f32 %v2196_v51, 1.0  ;;  %v2251_v56 = vcvt.s32.f32 %v963_v8  ;;  %v4030_v8 = vld [vmem:[#allocation42_spill] sm:$0xff] }
  0x56   :  { %3985 = vst [vmem:[#allocation73_spill] sm:$0xff] %v2222_v46  ;;  %3986 = vst [vmem:[#allocation74_spill] sm:$0xff] %v2224_v38  ;;  %v2253_v1 = vcvt.s32.f32 %v964_v41  ;;  %v2255_v42 = vcvt.s32.f32 %v965_v13  ;;  %vm997_vm8 = vcmp.eq.f32.partialorder %v2196_v51, 2.0  ;;  %v2258_v20 = vcvt.s32.f32 %v966_v44 }
  0x57   :  { %3987 = vst [vmem:[#allocation75_spill] sm:$0xff] %v2226_v6  ;;  %3988 = vst [vmem:[#allocation76_spill] sm:$0xff] %v2228_v47  ;;  %v1026_v15 = vmin.f32 %v2200_v52, 1.0  ;;  %v1051_v19 = vsel %vm995_vm14, 0.95492965, %v1023_v0  ;;  %vm998_vm12 = vcmp.eq.f32.partialorder %v2200_v52, 2.0  ;;  %v4004_v13 = vsel %vm1768_vm0, %v1734_v21, %v1933_v33 }
  0x58   :  { %3989 = vst [vmem:[#allocation77_spill] sm:$0xff] %v2230_v45  ;;  %3990 = vst [vmem:[#allocation78_spill] sm:$0xff] %v2232_v63  ;;  %v1052_v49 = vsel %vm996_vm15, 0.95492965, %v1024_v16  ;;  %vm999_vm13 = vcmp.eq.f32.partialorder %v2204_v7, 2.0  ;;  %vm1001_vm7 = vcmp.eq.f32.partialorder %v2210_v34, 2.0  ;;  %v1079_v18 = vmul.f32 %v1051_v19, %v4004_v13 }
  0x59   :  { %3991 = vst [vmem:[#allocation79_spill] sm:$0xff] %v2234_v50  ;;  %3992 = vst [vmem:[#allocation80_spill] sm:$0xff] %v2238_v55  ;;  %vm1002_vm11 = vcmp.eq.f32.partialorder %v2212_v39, 2.0  ;;  %v1027_v41 = vmin.f32 %v2204_v7, 1.0  ;;  %v1053_v27 = vsel %vm997_vm8, 0.95492965, %v1025_v30  ;;  %v4009_v26 = vsel %vm1780_vm2, %v1740_v9, %v1941_v32 }
  0x5a   :  { %3993 = vst [vmem:[#allocation81_spill] sm:$0xff] %v2240_v57  ;;  %3994 = vst [vmem:[#allocation82_spill] sm:$0xff] %v2244_v40  ;;  %v4001_v44 = vand.u32 2147483647, %v1664_v25  ;;  %v4005_v25 = vsel %vm1774_vm1, %v1737_v17, %v1937_v11  ;;  %vm1007_vm8 = vcmp.eq.f32.partialorder %v2222_v46, 2.0  ;;  %vm1008_vm14 = vcmp.eq.f32.partialorder %v2224_v38, 2.0 }
  0x5b   :  { %3995 = vst [vmem:[#allocation83_spill] sm:$0xff] %v2246_v36  ;;  %3996 = vst [vmem:[#allocation84_spill] sm:$0xff] %v2248_v37  ;;  %v1080_v0 = vmul.f32 %v1052_v49, %v4005_v25  ;;  %v1028_v16 = vmin.f32 %v2208_v60, 1.0  ;;  %v1054_v30 = vsel %vm998_vm12, 0.95492965, %v1026_v15  ;;  %v1029_v17 = vmin.f32 %v2210_v34, 1.0 }
  0x5c   :  { %3997 = vst [vmem:[#allocation85_spill] sm:$0xff] %v2251_v56  ;;  %3998 = vst [vmem:[#allocation86_spill] sm:$0xff] %v2253_v1  ;;  %vm2270_vm6 = vcmp.lt.f32.partialorder %v4001_v44, 1.0  ;;  %v1030_v33 = vmin.f32 %v2212_v39, 1.0  ;;  %v1081_v49 = vmul.f32 %v1053_v27, %v4009_v26  ;;  %v1032_v11 = vmin.f32 %v2216_v3, 1.0  ;;  %v4042_v21 = vld [vmem:[#allocation43_spill] sm:$0xff] }
  0x5d   :  { %3999 = vst [vmem:[#allocation87_spill] sm:$0xff] %v2255_v42  ;;  %4000 = vst [vmem:[#allocation88_spill] sm:$0xff] %v2258_v20  ;;  %v1033_v15 = vmin.f32 %v2218_v62, 1.0  ;;  %v1034_v19 = vmin.f32 %v2220_v24, 1.0  ;;  %v1055_v44 = vsel %vm999_vm13, 0.95492965, %v1027_v41  ;;  %v4013_v41 = vsel %vm1798_vm3, %v1743_v2, %v1969_v31 }
  0x5e   :  { %v4010_v13 = vand.u32 2147483647, %v1669_v28  ;;  %vm1014_vm2 = vcmp.eq.f32.partialorder %v2238_v55, 2.0  ;;  %v1035_v9 = vmin.f32 %v2222_v46, 1.0  ;;  %v1036_v32 = vmin.f32 %v2224_v38, 1.0  ;;  %v4062_v7 = vld [vmem:[#allocation24_spill] sm:$0xff] }
  0x5f   :  { %v1082_v28 = vmul.f32 %v1054_v30, %v4013_v41  ;;  %v1163_v27 = vadd.f32 %v1080_v0, %v1079_v18  ;;  %v1037_v25 = vmin.f32 %v2226_v6, 1.0  ;;  %v1038_v4 = vmin.f32 %v2228_v47, 1.0 }
  0x60   :  { %vm2318_vm15 = vcmp.lt.f32.partialorder %v4010_v13, 1.0  ;;  %v1039_v26 = vmin.f32 %v2230_v45, 1.0  ;;  %vm4014_vm0 = vcmp.eq.f32.partialorder %v2208_v60, 2.0  ;;  %v4015_v43 = vand.u32 2147483647, %v1671_v29 }
  0x61   :  { %v1056_v13 = vsel %vm4014_vm0, 0.95492965, %v1028_v16  ;;  %vm1019_vm3 = vcmp.eq.f32.partialorder %v2251_v56, 2.0  ;;  %vm1020_vm13 = vcmp.eq.f32.partialorder %v2253_v1, 2.0  ;;  %vm1021_vm1 = vcmp.eq.f32.partialorder %v2255_v42, 2.0 }
  0x62   :  { %vm2341_vm12 = vcmp.lt.f32.partialorder %v4015_v43, 1.0  ;;  %v1040_v2 = vmin.f32 %v2232_v63, 1.0  ;;  %v1041_v31 = vmin.f32 %v2234_v50, 1.0  ;;  %v4018_v18 = vsel %vm1804_vm4, %v1746_v58, %v1973_v53 }
  0x63   :  { %v1083_v29 = vmul.f32 %v1055_v44, %v4018_v18  ;;  %v1164_v0 = vadd.f32 %v1163_v27, %v1081_v49  ;;  %vm1022_vm0 = vcmp.eq.f32.partialorder %v2258_v20, 2.0  ;;  %v1042_v16 = vmin.f32 %v2238_v55, 1.0  ;;  %v20_v55 = vld [vmem:[%s3540_s0] sm:$0xff] }
  0x64   :  { %v1043_v30 = vmin.f32 %v2240_v57, 1.0  ;;  %v1044_v41 = vmin.f32 %v2244_v40, 1.0  ;;  %v1057_v43 = vsel %vm1001_vm7, 0.95492965, %v1029_v17  ;;  %v1045_v60 = vmin.f32 %v2246_v36, 1.0 }
  0x65   :  { %v1046_v61 = vmin.f32 %v2248_v37, 1.0  ;;  %v4019_v58 = vsel %vm1810_vm5, %v1749_v48, %v1977_v23  ;;  %v1165_v49 = vadd.f32 %v1164_v0, %v1082_v28  ;;  %v1047_v44 = vmin.f32 %v2251_v56, 1.0  ;;  %v4022_v28 = vld [vmem:[#allocation59_spill] sm:$0xff] }
  0x66   :  { %v1084_v53 = vmul.f32 %v1056_v13, %v4019_v58  ;;  %v1048_v27 = vmin.f32 %v2253_v1, 1.0  ;;  %v1049_v18 = vmin.f32 %v2255_v42, 1.0  ;;  %v1058_v17 = vsel %vm1002_vm11, 0.95492965, %v1030_v33  ;;  %v4023_v13 = vld [vmem:[#allocation29_spill] sm:$0xff]  ;;  %v4075_v42 = vld [vmem:[#allocation48_spill] sm:$0xff] }
  0x67   :  { %v1050_v34 = vmin.f32 %v2258_v20, 1.0  ;;  %v1059_v52 = vsel %vm1003_vm10, 0.95492965, %v1031_v10  ;;  %vm4020_vm4 = vnez %v3804_v5  ;;  %v1166_v23 = vadd.f32 %v1165_v49, %v1083_v29  ;;  %v4029_v29 = vld [vmem:[#allocation4_spill] sm:$0xff] }
  0x68   :  { %v4021_v48 = vsel %vm4020_vm4, %v1752_v22, %v1981_v35  ;;  %v928_v0 = vsel %vm2270_vm6, %v4023_v13, %v4022_v28  ;;  %vm4024_vm5 = vcmp.eq.f32.partialorder %v2216_v3, 2.0  ;;  %vm4025_vm7 = vcmp.eq.f32.partialorder %v2218_v62, 2.0  ;;  %v4027_v35 = vld [vmem:[#allocation16_spill] sm:$0xff]  ;;  %v4033_v28 = vld [vmem:[#allocation30_spill] sm:$0xff] }
  0x69   :  { %v1085_v54 = vmul.f32 %v1057_v43, %v4021_v48  ;;  %v1060_v33 = vsel %vm4024_vm5, 0.95492965, %v1032_v11  ;;  %v1061_v58 = vsel %vm4025_vm7, 0.95492965, %v1033_v15  ;;  %vm4026_vm10 = vcmp.eq.f32.partialorder %v2220_v24, 2.0  ;;  %v4032_v11 = vld [vmem:[#allocation60_spill] sm:$0xff] }
  0x6a   :  { %v1062_v10 = vsel %vm4026_vm10, 0.95492965, %v1034_v19  ;;  %v1063_v5 = vsel %vm1007_vm8, 0.95492965, %v1035_v9  ;;  %v1064_v22 = vsel %vm1008_vm14, 0.95492965, %v1036_v32  ;;  %vm4028_vm11 = vnez %v4027_v35 }
  0x6b   :  { %v4031_v43 = vsel %vm4028_vm11, %v4029_v29, %v4030_v8  ;;  %v1167_v48 = vadd.f32 %v1166_v23, %v1084_v53  ;;  %v929_v15 = vsel %vm2294_vm9, %v4033_v28, %v4032_v11  ;;  %vm4034_vm6 = vcmp.eq.f32.partialorder %v2226_v6, 2.0  ;;  %v4041_v23 = vld [vmem:[#allocation5_spill] sm:$0xff]  ;;  %v22_v24 = vld [vmem:[%s3540_s0 + $0x10] sm:$0xff] }
  0x6c   :  { %v1086_v49 = vmul.f32 %v1058_v17, %v4031_v43  ;;  %v1065_v19 = vsel %vm4034_vm6, 0.95492965, %v1037_v25  ;;  %vm4035_vm8 = vcmp.eq.f32.partialorder %v2228_v47, 2.0  ;;  %vm4036_vm14 = vcmp.eq.f32.partialorder %v2230_v45, 2.0  ;;  %v4039_v17 = vld [vmem:[#allocation17_spill] sm:$0xff]  ;;  %v4045_v43 = vld [vmem:[#allocation31_spill] sm:$0xff] }
  0x6d   :  { %v1066_v9 = vsel %vm4035_vm8, 0.95492965, %v1038_v4  ;;  %v1067_v32 = vsel %vm4036_vm14, 0.95492965, %v1039_v26  ;;  %vm4037_vm4 = vcmp.eq.f32.partialorder %v2232_v63, 2.0  ;;  %vm4038_vm5 = vcmp.eq.f32.partialorder %v2234_v50, 2.0 }
  0x6e   :  { %v1068_v13 = vsel %vm4037_vm4, 0.95492965, %v1040_v2  ;;  %v1069_v53 = vsel %vm4038_vm5, 0.95492965, %v1041_v31  ;;  %vm4040_vm7 = vnez %v4039_v17  ;;  %v1168_v8 = vadd.f32 %v1167_v48, %v1085_v54  ;;  %v4044_v25 = vld [vmem:[#allocation61_spill] sm:$0xff]  ;;  %v4050_v54 = vld [vmem:[#allocation18_spill] sm:$0xff] }
  0x6f   :  { %v4043_v35 = vsel %vm4040_vm7, %v4041_v23, %v4042_v21  ;;  %v930_v4 = vsel %vm2318_vm15, %v4045_v43, %v4044_v25  ;;  %v1070_v26 = vsel %vm1014_vm2, 0.95492965, %v1042_v16  ;;  %vm4046_vm9 = vcmp.eq.f32.partialorder %v2240_v57, 2.0  ;;  %v4052_v48 = vld [vmem:[#allocation6_spill] sm:$0xff]  ;;  %v4056_v21 = vld [vmem:[#allocation36_spill] sm:$0xff]  ;;  %v4057_v25 = vld [vmem:[#allocation19_spill] sm:$0xff] }
  0x70   :  { %v1087_v29 = vmul.f32 %v1059_v52, %v4043_v35  ;;  %v1071_v2 = vsel %vm4046_vm9, 0.95492965, %v1043_v30  ;;  %vm4047_vm10 = vcmp.eq.f32.partialorder %v2244_v40, 2.0  ;;  %vm4048_vm11 = vcmp.eq.f32.partialorder %v2246_v36, 2.0  ;;  %v4055_v16 = vld [vmem:[#allocation62_spill] sm:$0xff] }
  0x71   :  { %v1072_v31 = vsel %vm4047_vm10, 0.95492965, %v1044_v41  ;;  %v1073_v11 = vsel %vm4048_vm11, 0.95492965, %v1045_v60  ;;  %vm4049_vm6 = vcmp.eq.f32.partialorder %v2248_v37, 2.0  ;;  %vm4051_vm8 = vnez %v4050_v54  ;;  %v4064_v54 = vld [vmem:[#allocation8_spill] sm:$0xff] }
  0x72   :  { %v1074_v52 = vsel %vm4049_vm6, 0.95492965, %v1046_v61  ;;  %v4054_v28 = vsel %vm4051_vm8, %v4052_v48, %v4053_v12  ;;  %v1169_v23 = vadd.f32 %v1168_v8, %v1086_v49  ;;  %v931_v30 = vsel %vm2341_vm12, %v4056_v21, %v4055_v16  ;;  %v4060_v49 = vld [vmem:[#allocation45_spill] sm:$0xff]  ;;  %v4065_v48 = vld [vmem:[#allocation46_spill] sm:$0xff] }
  0x73   :  { %v1088_v17 = vmul.f32 %v1060_v33, %v4054_v28  ;;  %v1075_v41 = vsel %vm1019_vm3, 0.95492965, %v1047_v44  ;;  %v1076_v60 = vsel %vm1020_vm13, 0.95492965, %v1048_v27  ;;  %v1077_v61 = vsel %vm1021_vm1, 0.95492965, %v1049_v18 }
  0x74   :  { %v1078_v35 = vsel %vm1022_vm0, 0.95492965, %v1050_v34  ;;  %vm4058_vm15 = vnez %v4057_v25  ;;  %v4059_v33 = vld [vmem:[#allocation7_spill] sm:$0xff]  ;;  %vm4063_vm12 = vnez %v4062_v7  ;;  %v1170_v28 = vadd.f32 %v1169_v23, %v1087_v29  ;;  %v4067_v27 = vld [vmem:[#allocation25_spill] sm:$0xff]  ;;  %v4072_v34 = vld [vmem:[#allocation26_spill] sm:$0xff] }
  0x75   :  { %v4061_v8 = vsel %vm4058_vm15, %v4059_v33, %v4060_v49  ;;  %v4066_v44 = vsel %vm4063_vm12, %v4064_v54, %v4065_v48  ;;  %vm4068_vm2 = vnez %v4067_v27  ;;  %v4069_v16 = vld [vmem:[#allocation9_spill] sm:$0xff]  ;;  %v4070_v18 = vld [vmem:[#allocation47_spill] sm:$0xff]  ;;  %vm4073_vm1 = vnez %v4072_v34  ;;  %v4074_v25 = vld [vmem:[#allocation10_spill] sm:$0xff] }
  0x76   :  { %v1089_v43 = vmul.f32 %v1061_v58, %v4061_v8  ;;  %v1090_v12 = vmul.f32 %v1062_v10, %v4066_v44  ;;  %v4071_v21 = vsel %vm4068_vm2, %v4069_v16, %v4070_v18  ;;  %v4076_v1 = vsel %vm4073_vm1, %v4074_v25, %v4075_v42  ;;  %v4077_v58 = vld [vmem:[#allocation27_spill] sm:$0xff]  ;;  %v4080_v8 = vld [vmem:[#allocation49_spill] sm:$0xff]  ;;  %v4082_v10 = vld [vmem:[#allocation32_spill] sm:$0xff] }
  0x77   :  { %v1091_v20 = vmul.f32 %v1063_v5, %v4071_v21  ;;  %v1092_v33 = vmul.f32 %v1064_v22, %v4076_v1  ;;  %vm4078_vm13 = vnez %v4077_v58  ;;  %v4079_v49 = vld [vmem:[#allocation11_spill] sm:$0xff]  ;;  %vm4083_vm3 = vnez %v4082_v10  ;;  %v4084_v29 = vld [vmem:[#allocation12_spill] sm:$0xff]  ;;  %v4085_v23 = vld [vmem:[#allocation50_spill] sm:$0xff] }
  0x78   :  { %v4081_v7 = vsel %vm4078_vm13, %v4079_v49, %v4080_v8  ;;  %v4086_v48 = vsel %vm4083_vm3, %v4084_v29, %v4085_v23  ;;  %v4087_v27 = vld [vmem:[#allocation33_spill] sm:$0xff]  ;;  %v4090_v16 = vld [vmem:[#allocation51_spill] sm:$0xff]  ;;  %v4092_v42 = vld [vmem:[#allocation34_spill] sm:$0xff] }
  0x79   :  { %v1093_v54 = vmul.f32 %v1065_v19, %v4081_v7  ;;  %v1094_v44 = vmul.f32 %v1066_v9, %v4086_v48  ;;  %vm4088_vm0 = vnez %v4087_v27  ;;  %v4089_v5 = vld [vmem:[#allocation13_spill] sm:$0xff]  ;;  %vm4093_vm14 = vnez %v4092_v42  ;;  %v4094_v1 = vld [vmem:[#allocation14_spill] sm:$0xff]  ;;  %v4095_v22 = vld [vmem:[#allocation52_spill] sm:$0xff] }
  0x7a   :  { %v4091_v18 = vsel %vm4088_vm0, %v4089_v5, %v4090_v16  ;;  %v4096_v34 = vsel %vm4093_vm14, %v4094_v1, %v4095_v22  ;;  %v4097_v19 = vld [vmem:[#allocation35_spill] sm:$0xff]  ;;  %v4100_v49 = vld [vmem:[#allocation53_spill] sm:$0xff]  ;;  %v1171_v9 = vadd.f32 %v1170_v28, %v1088_v17  ;;  %v36_v10 = vld [vmem:[%s3539_s1] sm:$0xff] }
  0x7b   :  { %v1095_v21 = vmul.f32 %v1067_v32, %v4091_v18  ;;  %v2490_v25 = vmul.f32 %v1068_v13, %v4096_v34  ;;  %vm4098_vm4 = vnez %v4097_v19  ;;  %v4099_v58 = vld [vmem:[#allocation15_spill] sm:$0xff]  ;;  %v4102_v32 = vld [vmem:[#allocation37_spill] sm:$0xff]  ;;  %v4104_v29 = vld [vmem:[#allocation20_spill] sm:$0xff] }
  0x7c   :  { %v4101_v8 = vsel %vm4098_vm4, %v4099_v58, %v4100_v49  ;;  %vm4103_vm5 = vnez %v4102_v32  ;;  %v4105_v23 = vld [vmem:[#allocation54_spill] sm:$0xff]  ;;  %v4109_v5 = vld [vmem:[#allocation21_spill] sm:$0xff]  ;;  %v4110_v16 = vld [vmem:[#allocation55_spill] sm:$0xff] }
  0x7d   :  { %v2497_v7 = vmul.f32 %v1069_v53, %v4101_v8  ;;  %v4106_v48 = vsel %vm4103_vm5, %v4104_v29, %v4105_v23  ;;  %v4107_v13 = vld [vmem:[#allocation38_spill] sm:$0xff]  ;;  %v4112_v53 = vld [vmem:[#allocation39_spill] sm:$0xff]  ;;  %v4115_v28 = vld [vmem:[#allocation56_spill] sm:$0xff] }
  0x7e   :  { %v2507_v27 = vmul.f32 %v1070_v26, %v4106_v48  ;;  %vm4108_vm7 = vnez %v4107_v13  ;;  %vm4113_vm9 = vnez %v4112_v53  ;;  %v4114_v17 = vld [vmem:[#allocation22_spill] sm:$0xff]  ;;  %v4117_v34 = vld [vmem:[#allocation40_spill] sm:$0xff]  ;;  %v4119_v19 = vld [vmem:[#allocation23_spill] sm:$0xff]  ;;  %v2542_v13 = vmul.f32 %v1076_v60, %v929_v15 }
  0x7f   :  { %v4111_v18 = vsel %vm4108_vm7, %v4109_v5, %v4110_v16  ;;  %v4116_v1 = vsel %vm4113_vm9, %v4114_v17, %v4115_v28  ;;  %vm4118_vm10 = vnez %v4117_v34  ;;  %v4120_v58 = vld [vmem:[#allocation57_spill] sm:$0xff]  ;;  %v37_v8 = vld [vmem:[%s3539_s1 + $0x8] sm:$0xff]  ;;  %v4124_v32 = vld [vmem:[#allocation28_spill] sm:$0xff]  ;;  %v1172_v5 = vadd.f32 %v1171_v9, %v1089_v43 }
  0x80   :  { %v2514_v42 = vmul.f32 %v1071_v2, %v4111_v18  ;;  %v2521_v22 = vmul.f32 %v1072_v31, %v4116_v1  ;;  %v4121_v26 = vsel %vm4118_vm10, %v4119_v19, %v4120_v58  ;;  %v4122_v2 = vld [vmem:[#allocation41_spill] sm:$0xff]  ;;  %v4125_v29 = vld [vmem:[#allocation58_spill] sm:$0xff]  ;;  %v2540_v31 = vmul.f32 %v1075_v41, %v928_v0 }
  0x81   :  { %v2528_v49 = vmul.f32 %v1073_v11, %v4121_v26  ;;  %vm4123_vm11 = vnez %v4122_v2  ;;  %v38_v11 = vld [vmem:[%s3539_s1 + $0x10] sm:$0xff]  ;;  %v2547_v16 = vmul.f32 %v1077_v61, %v930_v4  ;;  %v2549_v18 = vmul.f32 %v1078_v35, %v931_v30 }
  0x82   :  { %v4126_v23 = vsel %vm4123_vm11, %v4124_v32, %v4125_v29  ;;  %v40_v53 = vunpack.c.0.s8 %v36_v10  ;;  %v41_v17 = vunpack.c.1.s8 %v36_v10  ;;  %v1173_v28 = vadd.f32 %v1172_v5, %v1090_v12 }
  0x83   :  { %v2538_v48 = vmul.f32 %v1074_v52, %v4126_v23  ;;  %v39_v52 = vld [vmem:[%s3539_s1 + $0x18] sm:$0xff]  ;;  %v42_v0 = vunpack.c.2.s8 %v36_v10  ;;  %v43_v41 = vunpack.c.3.s8 %v36_v10  ;;  %v44_v15 = vunpack.c.0.s8 %v37_v8 }
  0x84   :  { %v45_v60 = vunpack.c.1.s8 %v37_v8  ;;  %v46_v43 = vunpack.c.2.s8 %v37_v8  ;;  %v47_v9 = vunpack.c.3.s8 %v37_v8  ;;  %v48_v1 = vunpack.c.0.s8 %v38_v11 }
  0x85   :  { %v1174_v34 = vadd.f32 %v1173_v28, %v1091_v20  ;;  %v49_v19 = vunpack.c.1.s8 %v38_v11  ;;  %v50_v4 = vunpack.c.2.s8 %v38_v11  ;;  %v51_v61 = vunpack.c.3.s8 %v38_v11 }
  0x86   :  { %v52_v30 = vunpack.c.0.s8 %v39_v52  ;;  %v53_v35 = vunpack.c.1.s8 %v39_v52  ;;  %v54_v58 = vunpack.c.2.s8 %v39_v52  ;;  %v55_v26 = vunpack.c.3.s8 %v39_v52 }
  0x87   :  { %v1175_v12 = vadd.f32 %v1174_v34, %v1092_v33  ;;  %v2554_v2 = vcvt.s32.f32 %v40_v53  ;;  %v2556_v32 = vcvt.s32.f32 %v41_v17  ;;  %v2558_v29 = vcvt.s32.f32 %v42_v0 }
  0x88   :  { %v2560_v10 = vcvt.s32.f32 %v43_v41  ;;  %v2562_v23 = vcvt.s32.f32 %v44_v15  ;;  %v2564_v8 = vcvt.s32.f32 %v45_v60  ;;  %v2566_v20 = vcvt.s32.f32 %v46_v43 }
  0x89   :  { %4127 = vst [vmem:[#allocation59_spill] sm:$0xff] %v2554_v2  ;;  %4128 = vst [vmem:[#allocation29_spill] sm:$0xff] %v2556_v32  ;;  %v1176_v5 = vadd.f32 %v1175_v12, %v1093_v54  ;;  %v2568_v11 = vcvt.s32.f32 %v47_v9  ;;  %v2570_v28 = vcvt.s32.f32 %v48_v1  ;;  %v2572_v33 = vcvt.s32.f32 %v49_v19 }
  0x8a   :  { %4129 = vst [vmem:[#allocation16_spill] sm:$0xff] %v2558_v29  ;;  %4130 = vst [vmem:[#allocation4_spill] sm:$0xff] %v2560_v10  ;;  %v2574_v53 = vcvt.s32.f32 %v50_v4  ;;  %v2576_v17 = vcvt.s32.f32 %v51_v61  ;;  %v2578_v52 = vcvt.s32.f32 %v52_v30  ;;  %v2580_v0 = vcvt.s32.f32 %v53_v35 }
  0x8b   :  { %4131 = vst [vmem:[#allocation42_spill] sm:$0xff] %v2562_v23  ;;  %4132 = vst [vmem:[#allocation60_spill] sm:$0xff] %v2564_v8  ;;  %v1177_v41 = vadd.f32 %v1176_v5, %v1094_v44  ;;  %v2582_v15 = vcvt.s32.f32 %v54_v58  ;;  %v2584_v60 = vcvt.s32.f32 %v55_v26  ;;  %vm72_vm6 = vcmp.eq.f32.partialorder %v2554_v2, 3.0 }
  0x8c   :  { %4133 = vst [vmem:[#allocation30_spill] sm:$0xff] %v2566_v20  ;;  %4134 = vst [vmem:[#allocation17_spill] sm:$0xff] %v2568_v11  ;;  %vm73_vm8 = vcmp.eq.f32.partialorder %v2556_v32, 3.0  ;;  %vm74_vm15 = vcmp.eq.f32.partialorder %v2558_v29, 3.0  ;;  %vm75_vm12 = vcmp.eq.f32.partialorder %v2560_v10, 3.0  ;;  %vm76_vm2 = vcmp.eq.f32.partialorder %v2562_v23, 3.0 }
  0x8d   :  { %4135 = vst [vmem:[#allocation5_spill] sm:$0xff] %v2570_v28  ;;  %4136 = vst [vmem:[#allocation43_spill] sm:$0xff] %v2572_v33  ;;  %v1178_v54 = vadd.f32 %v1177_v41, %v1095_v21  ;;  %vm77_vm1 = vcmp.eq.f32.partialorder %v2564_v8, 3.0  ;;  %vm78_vm13 = vcmp.eq.f32.partialorder %v2566_v20, 3.0  ;;  %vm79_vm3 = vcmp.eq.f32.partialorder %v2568_v11, 3.0 }
  0x8e   :  { %4137 = vst [vmem:[#allocation61_spill] sm:$0xff] %v2574_v53  ;;  %4138 = vst [vmem:[#allocation31_spill] sm:$0xff] %v2576_v17  ;;  %vm80_vm0 = vcmp.eq.f32.partialorder %v2570_v28, 3.0  ;;  %vm81_vm14 = vcmp.eq.f32.partialorder %v2572_v33, 3.0  ;;  %vm82_vm4 = vcmp.eq.f32.partialorder %v2574_v53, 3.0  ;;  %vm83_vm5 = vcmp.eq.f32.partialorder %v2576_v17, 3.0 }
  0x8f   :  { %4139 = vst [vmem:[#allocation18_spill] sm:$0xff] %v2578_v52  ;;  %4140 = vst [vmem:[#allocation6_spill] sm:$0xff] %v2580_v0  ;;  %v1179_v44 = vadd.f32 %v1178_v54, %v2490_v25  ;;  %vm84_vm7 = vcmp.eq.f32.partialorder %v2578_v52, 3.0  ;;  %vm85_vm9 = vcmp.eq.f32.partialorder %v2580_v0, 3.0  ;;  %vm86_vm10 = vcmp.eq.f32.partialorder %v2582_v15, 3.0  ;;  %v25_v0 = vld [vmem:[%s3540_s0 + $0x28] sm:$0xff] }
  0x90   :  { %4141 = vst [vmem:[#allocation44_spill] sm:$0xff] %v2582_v15  ;;  %4142 = vst [vmem:[#allocation62_spill] sm:$0xff] %v2584_v60  ;;  %vm87_vm11 = vcmp.eq.f32.partialorder %v2584_v60, 3.0  ;;  %v3637_v21 = vmov 0.0   ;;  %v24_v15 = vld [vmem:[%s3540_s0 + $0x20] sm:$0xff] }
  0x91   :  { %v2606_v43 = vsel %vm72_vm6, 1.0, %v3637_v21  ;;  %v2611_v9 = vsel %vm73_vm8, 1.0, %v3637_v21  ;;  %v2616_v25 = vsel %vm74_vm15, 1.0, %v3637_v21  ;;  %v1180_v1 = vadd.f32 %v1179_v44, %v2497_v7 }
  0x92   :  { %4143 = vst [vmem:[#allocation36_spill] sm:$0xff] %v2606_v43  ;;  %4144 = vst [vmem:[#allocation19_spill] sm:$0xff] %v2611_v9  ;;  %v2622_v34 = vsel %vm75_vm12, 1.0, %v3637_v21  ;;  %v2627_v19 = vsel %vm76_vm2, 1.0, %v3637_v21  ;;  %v2632_v4 = vsel %vm77_vm1, 1.0, %v3637_v21  ;;  %v2637_v61 = vsel %vm78_vm13, 1.0, %v3637_v21 }
  0x93   :  { %4145 = vst [vmem:[#allocation7_spill] sm:$0xff] %v2616_v25  ;;  %4146 = vst [vmem:[#allocation45_spill] sm:$0xff] %v2622_v34  ;;  %v2642_v7 = vsel %vm79_vm3, 1.0, %v3637_v21  ;;  %v2647_v30 = vsel %vm80_vm0, 1.0, %v3637_v21  ;;  %v2652_v35 = vsel %vm81_vm14, 1.0, %v3637_v21  ;;  %v1181_v58 = vadd.f32 %v1180_v1, %v2507_v27 }
  0x94   :  { %4147 = vst [vmem:[#allocation24_spill] sm:$0xff] %v2627_v19  ;;  %4148 = vst [vmem:[#allocation8_spill] sm:$0xff] %v2632_v4  ;;  %v2658_v26 = vsel %vm82_vm4, 1.0, %v3637_v21  ;;  %v2663_v12 = vsel %vm83_vm5, 1.0, %v3637_v21  ;;  %v2668_v5 = vsel %vm84_vm7, 1.0, %v3637_v21  ;;  %v2673_v41 = vsel %vm85_vm9, 1.0, %v3637_v21 }
  0x95   :  { %4149 = vst [vmem:[#allocation46_spill] sm:$0xff] %v2637_v61  ;;  %4150 = vst [vmem:[#allocation25_spill] sm:$0xff] %v2642_v7  ;;  %v2678_v27 = vsel %vm86_vm10, 1.0, %v3637_v21  ;;  %v2683_v54 = vsel %vm87_vm11, 1.0, %v3637_v21  ;;  %v120_v44 = vmul.f32 2.0, %v2606_v43  ;;  %v1182_v1 = vadd.f32 %v1181_v58, %v2514_v42 }
  0x96   :  { %4151 = vst [vmem:[#allocation9_spill] sm:$0xff] %v2647_v30  ;;  %4152 = vst [vmem:[#allocation47_spill] sm:$0xff] %v2652_v35  ;;  %v121_v50 = vmul.f32 2.0, %v2611_v9  ;;  %v122_v58 = vmul.f32 2.0, %v2616_v25  ;;  %v123_v37 = vmul.f32 2.0, %v2622_v34  ;;  %v124_v36 = vmul.f32 2.0, %v2627_v19 }
  0x97   :  { %4153 = vst [vmem:[#allocation26_spill] sm:$0xff] %v2658_v26  ;;  %4154 = vst [vmem:[#allocation10_spill] sm:$0xff] %v2663_v12  ;;  %v1183_v21 = vadd.f32 %v1182_v1, %v2521_v22  ;;  %v125_v40 = vmul.f32 2.0, %v2632_v4  ;;  %v1257_v56 = vadd.f32 -1.0, %v120_v44  ;;  %v126_v22 = vmul.f32 2.0, %v2637_v61 }
  0x98   :  { %4155 = vst [vmem:[#allocation48_spill] sm:$0xff] %v2668_v5  ;;  %4156 = vst [vmem:[#allocation27_spill] sm:$0xff] %v2673_v41  ;;  %v127_v1 = vmul.f32 2.0, %v2642_v7  ;;  %v128_v42 = vmul.f32 2.0, %v2647_v30  ;;  %v129_v63 = vmul.f32 2.0, %v2652_v35  ;;  %v130_v45 = vmul.f32 2.0, %v2658_v26 }
  0x99   :  { %4157 = vst [vmem:[#allocation11_spill] sm:$0xff] %v2678_v27  ;;  %4158 = vst [vmem:[#allocation49_spill] sm:$0xff] %v2683_v54  ;;  %v1184_v57 = vadd.f32 %v1183_v21, %v2528_v49  ;;  %v131_v47 = vmul.f32 2.0, %v2663_v12  ;;  %v1258_v6 = vadd.f32 -1.0, %v121_v50  ;;  %v21_v49 = vld [vmem:[%s3540_s0 + $0x8] sm:$0xff]  ;;  %v132_v21 = vmul.f32 2.0, %v2668_v5 }
  0x9a   :  { %v133_v38 = vmul.f32 2.0, %v2673_v41  ;;  %v1259_v46 = vadd.f32 -1.0, %v122_v58  ;;  %v134_v62 = vmul.f32 2.0, %v2678_v27  ;;  %v135_v3 = vmul.f32 2.0, %v2683_v54 }
  0x9b   :  { %v1185_v44 = vadd.f32 %v1184_v57, %v2538_v48  ;;  %v1260_v50 = vadd.f32 -1.0, %v123_v37  ;;  %v2722_v59 = vmul.f32 %v1257_v56, %v20_v55  ;;  %v23_v48 = vld [vmem:[%s3540_s0 + $0x18] sm:$0xff]  ;;  %v1261_v39 = vadd.f32 -1.0, %v124_v36 }
  0x9c   :  { %v1262_v60 = vadd.f32 -1.0, %v125_v40  ;;  %v1263_v58 = vadd.f32 -1.0, %v126_v22  ;;  %v1264_v37 = vadd.f32 -1.0, %v127_v1  ;;  %v1265_v55 = vadd.f32 -1.0, %v128_v42  ;;  %v26_v40 = vld [vmem:[%s3540_s0 + $0x30] sm:$0xff]  ;;  %v27_v36 = vld [vmem:[%s3540_s0 + $0x38] sm:$0xff] }
  0x9d   :  { %v1186_v57 = vadd.f32 %v1185_v44, %v2540_v31  ;;  %v1266_v56 = vadd.f32 -1.0, %v129_v63  ;;  %v2734_v51 = vmul.f32 %v1258_v6, %v21_v49  ;;  %v1267_v22 = vadd.f32 -1.0, %v130_v45  ;;  %v28_v63 = vld [vmem:[%s3540_s0 + $0x40] sm:$0xff]  ;;  %v29_v6 = vld [vmem:[%s3540_s0 + $0x48] sm:$0xff] }
  0x9e   :  { %v1268_v44 = vadd.f32 -1.0, %v131_v47  ;;  %v2743_v52 = vmul.f32 %v1259_v46, %v22_v24  ;;  %v1270_v42 = vadd.f32 -1.0, %v133_v38  ;;  %v2751_v1 = vmul.f32 %v1260_v50, %v23_v48  ;;  %v30_v24 = vld [vmem:[%s3540_s0 + $0x50] sm:$0xff]  ;;  %v31_v46 = vld [vmem:[%s3540_s0 + $0x58] sm:$0xff]  ;;  %v32_v38 = vld [vmem:[%s3540_s0 + $0x60] sm:$0xff] }
  0x9f   :  { %4159 = vst [vmem:[#allocation32_spill] sm:$0xff] %v2734_v51  ;;  %v1187_v31 = vadd.f32 %v1186_v57, %v2542_v13  ;;  %v1269_v13 = vadd.f32 -1.0, %v132_v21  ;;  %v168_v49 = vand.u32 2147483647, %v2722_v59  ;;  %v1271_v47 = vadd.f32 -1.0, %v134_v62 }
  0xa0   :  { %4160 = vst [vmem:[#allocation12_spill] sm:$0xff] %v2743_v52  ;;  %4161 = vst [vmem:[#allocation50_spill] sm:$0xff] %v2751_v1  ;;  %v2761_v45 = vmul.f32 %v1261_v39, %v24_v15  ;;  %v2763_v14 = vmul.f32 %v1262_v60, %v25_v0  ;;  %v1272_v21 = vadd.f32 -1.0, %v135_v3  ;;  %v2771_v50 = vmul.f32 %v1263_v58, %v26_v40  ;;  %v34_v39 = vld [vmem:[%s3540_s0 + $0x70] sm:$0xff]  ;;  %v35_v3 = vld [vmem:[%s3540_s0 + $0x78] sm:$0xff] }
  0xa1   :  { %v1188_v57 = vadd.f32 %v1187_v31, %v2547_v16  ;;  %v33_v16 = vld [vmem:[%s3540_s0 + $0x68] sm:$0xff]  ;;  %v2773_v48 = vmul.f32 %v1264_v37, %v27_v36  ;;  %v169_v31 = vand.u32 2147483647, %v2734_v51  ;;  %v2780_v0 = vmul.f32 %v1265_v55, %v28_v63 }
  0xa2   :  { %4162 = vst [vmem:[#allocation33_spill] sm:$0xff] %v2761_v45  ;;  %4163 = vst [vmem:[#allocation13_spill] sm:$0xff] %v2763_v14  ;;  %v2782_v15 = vmul.f32 %v1266_v56, %v29_v6  ;;  %v170_v60 = vand.u32 2147483647, %v2743_v52  ;;  %v2788_v58 = vmul.f32 %v1267_v22, %v30_v24  ;;  %v2790_v37 = vmul.f32 %v1268_v44, %v31_v46 }
  0xa3   :  { %4164 = vst [vmem:[#allocation51_spill] sm:$0xff] %v2771_v50  ;;  %4165 = vst [vmem:[#allocation34_spill] sm:$0xff] %v2773_v48  ;;  %v1189_v62 = vadd.f32 %v1188_v57, %v2549_v18  ;;  %v171_v18 = vand.u32 2147483647, %v2751_v1  ;;  %v184_v40 = vsub.f32 0.0, %v168_v49  ;;  %v2793_v36 = vmul.f32 %v1269_v13, %v32_v38 }
  0xa4   :  { %4166 = vst [vmem:[#allocation14_spill] sm:$0xff] %v2780_v0  ;;  %4167 = vst [vmem:[#allocation52_spill] sm:$0xff] %v2782_v15  ;;  %v2795_v55 = vmul.f32 %v1270_v42, %v33_v16  ;;  %v172_v56 = vand.u32 2147483647, %v2761_v45  ;;  %v173_v63 = vand.u32 2147483647, %v2763_v14  ;;  %v2799_v6 = vmul.f32 %v1271_v47, %v34_v39 }
  0xa5   :  { %4168 = vst [vmem:[#allocation35_spill] sm:$0xff] %v2788_v58  ;;  %4169 = vst [vmem:[#allocation15_spill] sm:$0xff] %v2790_v37  ;;  %1190 = vadd.xlane.f32.xlu1 %v1189_v62  ;;  %v174_v57 = vand.u32 2147483647, %v2771_v50  ;;  %v175_v22 = vand.u32 2147483647, %v2773_v48  ;;  %v2803_v24 = vmul.f32 %v1272_v21, %v35_v3 }
  0xa6   :  { %4170 = vst [vmem:[#allocation53_spill] sm:$0xff] %v2793_v36  ;;  %4171 = vst [vmem:[#allocation37_spill] sm:$0xff] %v2795_v55  ;;  %v185_v44 = vsub.f32 0.0, %v169_v31  ;;  %v176_v49 = vand.u32 2147483647, %v2780_v0  ;;  %v186_v46 = vsub.f32 0.0, %v170_v60 }
  0xa7   :  { %4172 = vst [vmem:[#allocation20_spill] sm:$0xff] %v2799_v6  ;;  %4173 = vst [vmem:[#allocation54_spill] sm:$0xff] %v2803_v24  ;;  %v177_v13 = vand.u32 2147483647, %v2782_v15  ;;  %v178_v38 = vand.u32 2147483647, %v2788_v58 }
  0xa8   :  { %v187_v16 = vsub.f32 0.0, %v171_v18  ;;  %v200_v62 = vmul.f32 1.442695, %v184_v40  ;;  %v179_v47 = vand.u32 2147483647, %v2790_v37  ;;  %v188_v3 = vsub.f32 0.0, %v172_v56 }
  0xa9   :  { %v180_v39 = vand.u32 2147483647, %v2793_v36  ;;  %v181_v11 = vand.u32 2147483647, %v2795_v55  ;;  %v182_v31 = vand.u32 2147483647, %v2799_v6 }
  0xaa   :  { %v202_v20 = vmul.f32 1.442695, %v185_v44  ;;  %v183_v42 = vand.u32 2147483647, %v2803_v24  ;;  %v189_v28 = vsub.f32 0.0, %v173_v63  ;;  %v190_v18 = vsub.f32 0.0, %v174_v57 }
  0xab   :  { %v204_v8 = vmul.f32 1.442695, %v186_v46  ;;  %v191_v40 = vsub.f32 0.0, %v175_v22  ;;  %1310 = vpow2.f32 %v200_v62  ;;  %v206_v23 = vmul.f32 1.442695, %v187_v16 }
  0xac   :  { %v192_v10 = vsub.f32 0.0, %v176_v49  ;;  %v193_v29 = vsub.f32 0.0, %v177_v13  ;;  %v194_v32 = vsub.f32 0.0, %v178_v38  ;;  %v195_v2 = vsub.f32 0.0, %v179_v47 }
  0xad   :  { %v196_v54 = vsub.f32 0.0, %v180_v39  ;;  %v197_v21 = vsub.f32 0.0, %v181_v11  ;;  %1312 = vpow2.f32 %v202_v20  ;;  %v208_v33 = vmul.f32 1.442695, %v188_v3 }
  0xae   :  { %v198_v56 = vsub.f32 0.0, %v182_v31  ;;  %v199_v44 = vsub.f32 0.0, %v183_v42  ;;  %1314 = vpow2.f32 %v204_v8  ;;  %v210_v60 = vmul.f32 1.442695, %v189_v28 }
  0xaf   :  { %1316 = vpow2.f32 %v206_v23  ;;  %v212_v63 = vmul.f32 1.442695, %v190_v18  ;;  %v232_v57 = vsub.f32 0.0, %v2722_v59  ;;  %v214_v22 = vmul.f32 1.442695, %v191_v40 }
  0xb0   :  { %v216_v46 = vmul.f32 1.442695, %v192_v10  ;;  %v218_v49 = vmul.f32 1.442695, %v193_v29  ;;  %1318 = vpow2.f32 %v208_v33  ;;  %v220_v13 = vmul.f32 1.442695, %v194_v32 }
  0xb1   :  { %v222_v38 = vmul.f32 1.442695, %v195_v2  ;;  %v224_v16 = vmul.f32 1.442695, %v196_v54  ;;  %1320 = vpow2.f32 %v210_v60  ;;  %v226_v20 = vmul.f32 1.442695, %v197_v21 }
  0xb2   :  { %v228_v11 = vmul.f32 1.442695, %v198_v56  ;;  %v2818_v62 = vmul.f32 1.442695, %v199_v44  ;;  %v233_v8 = vsub.f32 0.0, %v2734_v51  ;;  %v234_v28 = vsub.f32 0.0, %v2743_v52 }
  0xb3   :  { %v235_v23 = vsub.f32 0.0, %v2751_v1  ;;  %v236_v42 = vsub.f32 0.0, %v2761_v45  ;;  %1322 = vpow2.f32 %v212_v63  ;;  %v237_v29 = vsub.f32 0.0, %v2763_v14 }
  0xb4   :  { %v238_v32 = vsub.f32 0.0, %v2771_v50  ;;  %v239_v2 = vsub.f32 0.0, %v2773_v48  ;;  %1324 = vpow2.f32 %v214_v22  ;;  %v240_v33 = vsub.f32 0.0, %v2780_v0 }
  0xb5   :  { %v2827_v10 = vpop.eup %1310  ;;  %v241_v54 = vsub.f32 0.0, %v2782_v15  ;;  %v242_v47 = vsub.f32 0.0, %v2788_v58  ;;  %1326 = vpow2.f32 %v216_v46  ;;  %v243_v39 = vsub.f32 0.0, %v2790_v37 }
  0xb6   :  { %4174 = vst [vmem:[#allocation38_spill] sm:$0xff] %v2827_v10  ;;  %v244_v21 = vsub.f32 0.0, %v2793_v36  ;;  %v245_v31 = vsub.f32 0.0, %v2795_v55  ;;  %1328 = vpow2.f32 %v218_v49  ;;  %v246_v60 = vsub.f32 0.0, %v2799_v6 }
  0xb7   :  { %v2835_v3 = vpop.eup %1312  ;;  %v247_v18 = vsub.f32 0.0, %v2803_v24  ;;  %v2839_v40 = vmax.f32 %v232_v57, 0.0  ;;  %1330 = vpow2.f32 %v220_v13  ;;  %v2843_v44 = vmax.f32 %v233_v8, 0.0 }
  0xb8   :  { %4175 = vst [vmem:[#allocation21_spill] sm:$0xff] %v2835_v3  ;;  %v2841_v56 = vpop.eup %1314  ;;  %v2845_v63 = vmax.f32 %v234_v28, 0.0  ;;  %v2848_v22 = vadd.f32 1.0, %v2827_v10  ;;  %1332 = vpow2.f32 %v222_v38  ;;  %v2852_v49 = vmax.f32 %v235_v23, 0.0 }
  0xb9   :  { %4176 = vst [vmem:[#allocation55_spill] sm:$0xff] %v2841_v56  ;;  %v2850_v46 = vpop.eup %1316  ;;  %v2854_v53 = vmax.f32 %v236_v42, 0.0  ;;  %v2856_v17 = vmax.f32 %v237_v29, 0.0  ;;  %1334 = vpow2.f32 %v224_v16  ;;  %v2858_v57 = vmax.f32 %v238_v32, 0.0 }
  0xba   :  { %4177 = vst [vmem:[#allocation39_spill] sm:$0xff] %v2848_v22  ;;  %4178 = vst [vmem:[#allocation22_spill] sm:$0xff] %v2850_v46  ;;  %v2860_v13 = vmax.f32 %v239_v2, 0.0  ;;  %v2863_v8 = vadd.f32 1.0, %v2835_v3  ;;  %v2865_v28 = vpop.eup %1318  ;;  %1336 = vpow2.f32 %v226_v20  ;;  %v2867_v24 = vmax.f32 %v240_v33, 0.0 }
  0xbb   :  { %4180 = vst [vmem:[#allocation40_spill] sm:$0xff] %v2865_v28  ;;  %v2869_v38 = vmax.f32 %v241_v54, 0.0  ;;  %v2872_v23 = vadd.f32 1.0, %v2841_v56  ;;  %v2874_v42 = vpop.eup %1320  ;;  %v2876_v16 = vmax.f32 %v242_v47, 0.0  ;;  %v2878_v29 = vmax.f32 %v243_v39, 0.0 }
  0xbc   :  { %4179 = vst [vmem:[#allocation56_spill] sm:$0xff] %v2863_v8  ;;  %4182 = vst [vmem:[#allocation57_spill] sm:$0xff] %v2874_v42  ;;  %1338 = vlog2.f32 %v2848_v22  ;;  %v2882_v32 = vadd.f32 1.0, %v2850_v46  ;;  %v2884_v20 = vmax.f32 %v244_v21, 0.0  ;;  %v267_v2 = vmul.f32 -0.5, %v2827_v10 }
  0xbd   :  { %4181 = vst [vmem:[#allocation23_spill] sm:$0xff] %v2872_v23  ;;  %1340 = vpow2.f32 %v228_v11  ;;  %v276_v33 = vmul.f32 -0.5, %v2835_v3  ;;  %v2888_v54 = vpop.eup %1322  ;;  %v270_v6 = vand.u32 2147483647, %v2827_v10  ;;  %v285_v47 = vmul.f32 -0.5, %v2841_v56 }
  0xbe   :  { %4183 = vst [vmem:[#allocation41_spill] sm:$0xff] %v2882_v32  ;;  %4184 = vst [vmem:[#allocation28_spill] sm:$0xff] %v2884_v20  ;;  %1342 = vlog2.f32 %v2863_v8  ;;  %v2894_v39 = vadd.f32 1.0, %v2865_v28  ;;  %v2896_v27 = vpop.eup %1324  ;;  %v2898_v11 = vmax.f32 %v245_v31, 0.0  ;;  %v294_v21 = vmul.f32 -0.5, %v2850_v46 }
  0xbf   :  { %4185 = vst [vmem:[#allocation58_spill] sm:$0xff] %v2888_v54  ;;  %4187 = vst [vmem:[#allocation90_spill] sm:$0xff] %v2896_v27  ;;  %1344 = vlog2.f32 %v2872_v23  ;;  %v2903_v41 = vadd.f32 1.0, %v2874_v42  ;;  %v2905_v5 = vpop.eup %1326  ;;  %v2907_v12 = vmax.f32 %v246_v60, 0.0  ;;  %v2909_v26 = vmax.f32 %v247_v18, 0.0 }
  0xc0   :  { %4186 = vst [vmem:[#allocation89_spill] sm:$0xff] %v2894_v39  ;;  %4188 = vst [vmem:[#allocation91_spill] sm:$0xff] %v2898_v11  ;;  %1346 = vlog2.f32 %v2882_v32  ;;  %v303_v35 = vmul.f32 -0.5, %v2865_v28  ;;  %v2913_v30 = vpop.eup %1328  ;;  %v268_v31 = vadd.f32 1.0, %v267_v2  ;;  %v277_v7 = vadd.f32 1.0, %v276_v33 }
  0xc1   :  { %4189 = vst [vmem:[#allocation92_spill] sm:$0xff] %v2903_v41  ;;  %4190 = vst [vmem:[#allocation93_spill] sm:$0xff] %v2905_v5  ;;  %1348 = vpow2.f32 %v2818_v62  ;;  %v279_v61 = vand.u32 2147483647, %v2835_v3  ;;  %v2917_v4 = vpop.eup %1330  ;;  %vm2919_vm6 = vcmp.lt.f32.partialorder %v270_v6, 0.0004427343 }
  0xc2   :  { %4191 = vst [vmem:[#allocation94_spill] sm:$0xff] %v2907_v12  ;;  %4192 = vst [vmem:[#allocation95_spill] sm:$0xff] %v2909_v26  ;;  %v286_v60 = vadd.f32 1.0, %v285_v47  ;;  %v288_v18 = vand.u32 2147483647, %v2841_v56  ;;  %1350 = vlog2.f32 %v2894_v39  ;;  %v2926_v25 = vpop.eup %1332  ;;  %v295_v62 = vadd.f32 1.0, %v294_v21 }
  0xc3   :  { %4193 = vst [vmem:[#allocation96_spill] sm:$0xff] %v2913_v30  ;;  %4194 = vst [vmem:[#allocation97_spill] sm:$0xff] %v2917_v4  ;;  %v297_v34 = vand.u32 2147483647, %v2850_v46  ;;  %v306_v2 = vand.u32 2147483647, %v2865_v28  ;;  %1352 = vlog2.f32 %v2903_v41  ;;  %v2933_v6 = vpop.eup %1334  ;;  %v2943_v21 = vmul.f32 %v2827_v10, %v268_v31 }
  0xc4   :  { %v2931_v33 = vadd.f32 1.0, %v2888_v54  ;;  %v304_v32 = vadd.f32 1.0, %v303_v35  ;;  %v312_v47 = vmul.f32 -0.5, %v2874_v42  ;;  %v321_v23 = vmul.f32 -0.5, %v2888_v54  ;;  %v2940_v39 = vpop.eup %1336 }
  0xc5   :  { %v2938_v9 = vadd.f32 1.0, %v2896_v27  ;;  %vm2945_vm8 = vcmp.lt.f32.partialorder %v279_v61, 0.0004427343  ;;  %v315_v43 = vand.u32 2147483647, %v2874_v42  ;;  %v2951_v35 = vadd.f32 1.0, %v2905_v5 }
  0xc6   :  { %4197 = vst [vmem:[#allocation98_spill] sm:$0xff] %v2931_v33  ;;  %v1339_v26 = vpop.eup %1338  ;;  %v2954_v8 = vmul.f32 %v2835_v3, %v277_v7  ;;  %v2957_v22 = vmul.f32 %v2841_v56, %v286_v60  ;;  %vm2959_vm15 = vcmp.lt.f32.partialorder %v288_v18, 0.0004427343  ;;  %v2964_v61 = vadd.f32 1.0, %v2913_v30 }
  0xc7   :  { %4198 = vst [vmem:[#allocation99_spill] sm:$0xff] %v2938_v9  ;;  %4201 = vst [vmem:[#allocation100_spill] sm:$0xff] %v2951_v35  ;;  %v2966_v31 = vpop.eup %1340  ;;  %v2969_v10 = vmul.f32 %v2850_v46, %v295_v62  ;;  %vm2971_vm12 = vcmp.lt.f32.partialorder %v297_v34, 0.0004427343  ;;  %1354 = vlog2.f32 %v2931_v33  ;;  %v330_v7 = vmul.f32 -0.5, %v2896_v27 }
  0xc8   :  { %4204 = vst [vmem:[#allocation101_spill] sm:$0xff] %v2964_v61  ;;  %4205 = vst [vmem:[#allocation102_spill] sm:$0xff] %v2966_v31  ;;  %v2978_v60 = vadd.f32 1.0, %v2917_v4  ;;  %v1343_v18 = vpop.eup %1342  ;;  %v2981_v56 = vmul.f32 %v2865_v28, %v304_v32  ;;  %vm2983_vm2 = vcmp.lt.f32.partialorder %v306_v2, 0.0004427343  ;;  %v313_v62 = vadd.f32 1.0, %v312_v47 }
  0xc9   :  { %v322_v34 = vadd.f32 1.0, %v321_v23  ;;  %1356 = vlog2.f32 %v2938_v9  ;;  %v1345_v46 = vpop.eup %1344  ;;  %v2988_v12 = vmul.f32 0.6931472, %v1339_v26  ;;  %vm2990_vm1 = vcmp.lt.f32.partialorder %v315_v43, 0.0004427343 }
  0xca   :  { %4208 = vst [vmem:[#allocation103_spill] sm:$0xff] %v2978_v60  ;;  %v324_v37 = vand.u32 2147483647, %v2888_v54  ;;  %1358 = vlog2.f32 %v2951_v35  ;;  %v2997_v32 = vadd.f32 1.0, %v2926_v25  ;;  %v1347_v2 = vpop.eup %1346  ;;  %v333_v47 = vand.u32 2147483647, %v2896_v27 }
  0xcb   :  { %v339_v23 = vmul.f32 -0.5, %v2905_v5  ;;  %1360 = vlog2.f32 %v2964_v61  ;;  %v3003_v26 = vadd.f32 1.0, %v2933_v6  ;;  %v3005_v43 = vpop.eup %1348  ;;  %v3007_v9 = vmul.f32 0.6931472, %v1343_v18 }
  0xcc   :  { %4213 = vst [vmem:[#allocation104_spill] sm:$0xff] %v2997_v32  ;;  %4215 = vst [vmem:[#allocation106_spill] sm:$0xff] %v3005_v43  ;;  %v331_v28 = vadd.f32 1.0, %v330_v7  ;;  %v348_v35 = vmul.f32 -0.5, %v2913_v30  ;;  %1362 = vlog2.f32 %v2978_v60  ;;  %v1351_v58 = vpop.eup %1350  ;;  %v3011_v15 = vmul.f32 0.6931472, %v1345_v46 }
  0xcd   :  { %4214 = vst [vmem:[#allocation105_spill] sm:$0xff] %v3003_v26  ;;  %v3014_v11 = vmul.f32 %v2874_v42, %v313_v62  ;;  %v3017_v61 = vmul.f32 %v2888_v54, %v322_v34  ;;  %v342_v0 = vand.u32 2147483647, %v2905_v5  ;;  %v1353_v48 = vpop.eup %1352  ;;  %v3024_v18 = vmul.f32 0.6931472, %v1347_v2 }
  0xce   :  { %vm3026_vm13 = vcmp.lt.f32.partialorder %v324_v37, 0.0004427343  ;;  %1364 = vlog2.f32 %v2997_v32  ;;  %v3032_v46 = vadd.f32 1.0, %v2940_v39  ;;  %v340_v62 = vadd.f32 1.0, %v339_v23 }
  0xcf   :  { %v357_v34 = vmul.f32 -0.5, %v2917_v4  ;;  %1366 = vlog2.f32 %v3003_v26  ;;  %v3037_v54 = vadd.f32 1.0, %v2966_v31  ;;  %v3043_v2 = vmul.f32 0.6931472, %v1351_v58 }
  0xd0   :  { %4218 = vst [vmem:[#allocation107_spill] sm:$0xff] %v3032_v46  ;;  %v3046_v7 = vmul.f32 %v2896_v27, %v331_v28  ;;  %vm3048_vm3 = vcmp.lt.f32.partialorder %v333_v47, 0.0004427343  ;;  %v349_v23 = vadd.f32 1.0, %v348_v35  ;;  %v3056_v42 = vmul.f32 0.6931472, %v1353_v48 }
  0xd1   :  { %4219 = vst [vmem:[#allocation108_spill] sm:$0xff] %v3037_v54  ;;  %vm3058_vm0 = vcmp.lt.f32.partialorder %v342_v0, 0.0004427343  ;;  %v351_v58 = vand.u32 2147483647, %v2913_v30  ;;  %v1355_v28 = vpop.eup %1354  ;;  %v366_v37 = vmul.f32 -0.5, %v2926_v25  ;;  %1368 = vlog2.f32 %v3032_v46 }
  0xd2   :  { %v360_v47 = vand.u32 2147483647, %v2917_v4  ;;  %v3067_v35 = vadd.f32 1.0, %v3005_v43  ;;  %v299_v48 = vsel %vm2971_vm12, %v2969_v10, %v3024_v18  ;;  %v3074_v0 = vmul.f32 %v2905_v5, %v340_v62 }
  0xd3   :  { %v1357_v27 = vpop.eup %1356  ;;  %v358_v26 = vadd.f32 1.0, %v357_v34  ;;  %1370 = vlog2.f32 %v3037_v54  ;;  %v308_v46 = vsel %vm2983_vm2, %v2981_v56, %v3043_v2  ;;  %v3082_v45 = vmul.f32 %v2913_v30, %v349_v23  ;;  %v4251_v34 = vld [vmem:[#allocation51_spill] sm:$0xff]  ;;  %v4252_v2 = vld [vmem:[#allocation34_spill] sm:$0xff] }
  0xd4   :  { %4224 = vst [vmem:[#allocation109_spill] sm:$0xff] %v3067_v35  ;;  %v1359_v14 = vpop.eup %1358  ;;  %v375_v1 = vmul.f32 -0.5, %v2933_v6  ;;  %v384_v36 = vmul.f32 -0.5, %v2940_v39  ;;  %v317_v18 = vsel %vm2990_vm1, %v3014_v11, %v3056_v42  ;;  %v320_v62 = vmul.f32 0.6931472, %v1355_v28 }
  0xd5   :  { %v1361_v10 = vpop.eup %1360  ;;  %vm3090_vm14 = vcmp.lt.f32.partialorder %v351_v58, 0.0004427343  ;;  %v369_v3 = vand.u32 2147483647, %v2926_v25  ;;  %vm3095_vm4 = vcmp.lt.f32.partialorder %v360_v47, 0.0004427343  ;;  %1372 = vlog2.f32 %v3067_v35 }
  0xd6   :  { %v1363_v56 = vpop.eup %1362  ;;  %v367_v23 = vadd.f32 1.0, %v366_v37  ;;  %v393_v54 = vmul.f32 -0.5, %v2966_v31  ;;  %v329_v30 = vmul.f32 0.6931472, %v1357_v27  ;;  %v359_v42 = vmul.f32 %v2917_v4, %v358_v26 }
  0xd7   :  { %v378_v11 = vand.u32 2147483647, %v2933_v6  ;;  %v387_v33 = vand.u32 2147483647, %v2940_v39  ;;  %v338_v28 = vmul.f32 0.6931472, %v1359_v14  ;;  %v326_v37 = vsel %vm3026_vm13, %v3017_v61, %v320_v62 }
  0xd8   :  { %v1365_v58 = vpop.eup %1364  ;;  %v347_v5 = vmul.f32 0.6931472, %v1361_v10  ;;  %v376_v52 = vadd.f32 1.0, %v375_v1  ;;  %v385_v47 = vadd.f32 1.0, %v384_v36  ;;  %v356_v20 = vmul.f32 0.6931472, %v1363_v56 }
  0xd9   :  { %v1367_v51 = vpop.eup %1366  ;;  %v396_v35 = vand.u32 2147483647, %v2966_v31  ;;  %v402_v27 = vmul.f32 -0.5, %v3005_v43  ;;  %v368_v26 = vmul.f32 %v2926_v25, %v367_v23  ;;  %vm3110_vm5 = vcmp.lt.f32.partialorder %v369_v3, 0.0004427343  ;;  %v4263_v61 = vld [vmem:[#allocation38_spill] sm:$0xff] }
  0xda   :  { %v394_v14 = vadd.f32 1.0, %v393_v54  ;;  %v405_v1 = vand.u32 2147483647, %v3005_v43  ;;  %v335_v36 = vsel %vm3048_vm3, %v3046_v7, %v329_v30  ;;  %v365_v60 = vmul.f32 0.6931472, %v1365_v58  ;;  %v4254_v58 = vld [vmem:[#allocation91_spill] sm:$0xff] }
  0xdb   :  { %vm3118_vm7 = vcmp.lt.f32.partialorder %v378_v11, 0.0004427343  ;;  %vm3122_vm9 = vcmp.lt.f32.partialorder %v387_v33, 0.0004427343  ;;  %v1369_v62 = vpop.eup %1368  ;;  %v344_v54 = vsel %vm3058_vm0, %v3074_v0, %v338_v28  ;;  %v374_v3 = vmul.f32 0.6931472, %v1367_v51 }
  0xdc   :  { %v377_v56 = vmul.f32 %v2933_v6, %v376_v52  ;;  %v386_v32 = vmul.f32 %v2940_v39, %v385_v47  ;;  %v353_v7 = vsel %vm3090_vm14, %v3082_v45, %v347_v5  ;;  %v362_v23 = vsel %vm3095_vm4, %v359_v42, %v356_v20  ;;  %v4253_v42 = vld [vmem:[#allocation14_spill] sm:$0xff]  ;;  %v4256_v47 = vld [vmem:[#allocation52_spill] sm:$0xff]  ;;  %v4269_v11 = vld [vmem:[#allocation57_spill] sm:$0xff] }
  0xdd   :  { %v1371_v30 = vpop.eup %1370  ;;  %vm3136_vm10 = vcmp.lt.f32.partialorder %v396_v35, 0.0004427343  ;;  %v403_v33 = vadd.f32 1.0, %v402_v27  ;;  %v395_v50 = vmul.f32 %v2966_v31, %v394_v14  ;;  %vm3141_vm11 = vcmp.lt.f32.partialorder %v405_v1, 0.0004427343  ;;  %v4258_v27 = vld [vmem:[#allocation15_spill] sm:$0xff] }
  0xde   :  { %v4239_v52 = vsel %vm2919_vm6, %v2943_v21, %v2988_v12  ;;  %v4240_v45 = vsel %vm2945_vm8, %v2954_v8, %v3007_v9  ;;  %v371_v35 = vsel %vm3110_vm5, %v368_v26, %v365_v60  ;;  %v383_v0 = vmul.f32 0.6931472, %v1369_v62  ;;  %v4259_v14 = vld [vmem:[#allocation94_spill] sm:$0xff]  ;;  %v4262_v60 = vld [vmem:[#allocation37_spill] sm:$0xff]  ;;  %v4271_v51 = vld [vmem:[#allocation95_spill] sm:$0xff] }
  0xdf   :  { %v3151_v5 = vadd.f32 %v4239_v52, %v2839_v40  ;;  %v3159_v20 = vadd.f32 %v4240_v45, %v2843_v44  ;;  %v4241_v19 = vsel %vm2959_vm15, %v2957_v22, %v3011_v15  ;;  %v3172_v40 = vadd.f32 %v299_v48, %v2852_v49  ;;  %v1373_v41 = vpop.eup %1372  ;;  %v4247_v48 = vld [vmem:[#allocation12_spill] sm:$0xff]  ;;  %v4264_v62 = vld [vmem:[#allocation21_spill] sm:$0xff]  ;;  %v4273_v45 = vld [vmem:[#allocation58_spill] sm:$0xff] }
  0xe0   :  { %v3169_v12 = vadd.f32 %v4241_v19, %v2845_v63  ;;  %v380_v9 = vsel %vm3118_vm7, %v377_v56, %v374_v3  ;;  %v392_v44 = vmul.f32 0.6931472, %v1371_v30  ;;  %v3177_v4 = vadd.f32 %v308_v46, %v2854_v53  ;;  %v4265_v3 = vld [vmem:[#allocation55_spill] sm:$0xff]  ;;  %v4267_v30 = vld [vmem:[#allocation22_spill] sm:$0xff] }
  0xe1   :  { %v3180_v8 = vadd.f32 %v317_v18, %v2856_v17  ;;  %v404_v55 = vmul.f32 %v3005_v43, %v403_v33  ;;  %v3184_v15 = vadd.f32 %v326_v37, %v2858_v57  ;;  %v3187_v63 = vadd.f32 %v335_v36, %v2860_v13  ;;  %v4244_v13 = vld [vmem:[#allocation28_spill] sm:$0xff]  ;;  %v4250_v18 = vld [vmem:[#allocation13_spill] sm:$0xff]  ;;  %v4257_v37 = vld [vmem:[#allocation35_spill] sm:$0xff] }
  0xe2   :  { %v3190_v22 = vadd.f32 %v344_v54, %v2867_v24  ;;  %v3193_v49 = vadd.f32 %v353_v7, %v2869_v38  ;;  %v3196_v53 = vadd.f32 %v362_v23, %v2876_v16  ;;  %v3199_v17 = vadd.f32 %v371_v35, %v2878_v29  ;;  %v4246_v24 = vld [vmem:[#allocation32_spill] sm:$0xff]  ;;  %v4248_v16 = vld [vmem:[#allocation50_spill] sm:$0xff]  ;;  %v4249_v29 = vld [vmem:[#allocation33_spill] sm:$0xff] }
  0xe3   :  { %vm424_vm6 = vcmp.ge.f32.partialorder %v2722_v59, 0.0  ;;  %v389_v57 = vsel %vm3122_vm9, %v386_v32, %v383_v0  ;;  %v401_v21 = vmul.f32 0.6931472, %v1373_v41  ;;  %v3205_v46 = vadd.f32 %v380_v9, %v4244_v13  ;;  %v4261_v36 = vld [vmem:[#allocation53_spill] sm:$0xff]  ;;  %v4266_v32 = vld [vmem:[#allocation39_spill] sm:$0xff]  ;;  %v4268_v23 = vld [vmem:[#allocation40_spill] sm:$0xff] }
  0xe4   :  { %4242 = vst [vmem:[#allocation110_spill] sm:$0xff] %v3196_v53  ;;  %4243 = vst [vmem:[#allocation111_spill] sm:$0xff] %v3199_v17  ;;  %vm425_vm8 = vcmp.ge.f32.partialorder %v4246_v24, 0.0  ;;  %v398_v38 = vsel %vm3136_vm10, %v395_v50, %v392_v44  ;;  %vm426_vm15 = vcmp.ge.f32.partialorder %v4247_v48, 0.0  ;;  %vm427_vm12 = vcmp.ge.f32.partialorder %v4248_v16, 0.0  ;;  %v4270_v50 = vld [vmem:[#allocation56_spill] sm:$0xff] }
  0xe5   :  { %4245 = vst [vmem:[#allocation28_spill] sm:$0xff] %v3205_v46  ;;  %vm428_vm2 = vcmp.ge.f32.partialorder %v4249_v29, 0.0  ;;  %vm429_vm1 = vcmp.ge.f32.partialorder %v4250_v18, 0.0  ;;  %vm430_vm13 = vcmp.ge.f32.partialorder %v4251_v34, 0.0  ;;  %vm431_vm3 = vcmp.ge.f32.partialorder %v4252_v2, 0.0  ;;  %v4274_v0 = vld [vmem:[#allocation90_spill] sm:$0xff] }
  0xe6   :  { %vm432_vm0 = vcmp.ge.f32.partialorder %v4253_v42, 0.0  ;;  %v3218_v28 = vadd.f32 %v389_v57, %v4254_v58  ;;  %vm433_vm14 = vcmp.ge.f32.partialorder %v4256_v47, 0.0  ;;  %vm434_vm4 = vcmp.ge.f32.partialorder %v4257_v37, 0.0  ;;  %v4275_v41 = vld [vmem:[#allocation93_spill] sm:$0xff]  ;;  %v4276_v44 = vld [vmem:[#allocation96_spill] sm:$0xff]  ;;  %v4283_v34 = vld [vmem:[#allocation23_spill] sm:$0xff] }
  0xe7   :  { %vm435_vm5 = vcmp.ge.f32.partialorder %v4258_v27, 0.0  ;;  %v407_v26 = vsel %vm3141_vm11, %v404_v55, %v401_v21  ;;  %v3226_v1 = vadd.f32 %v398_v38, %v4259_v14  ;;  %vm436_vm7 = vcmp.ge.f32.partialorder %v4261_v36, 0.0  ;;  %v4277_v57 = vld [vmem:[#allocation97_spill] sm:$0xff]  ;;  %v4278_v13 = vld [vmem:[#allocation36_spill] sm:$0xff]  ;;  %v4279_v38 = vld [vmem:[#allocation19_spill] sm:$0xff] }
  0xe8   :  { %4255 = vst [vmem:[#allocation32_spill] sm:$0xff] %v3218_v28  ;;  %vm437_vm9 = vcmp.ge.f32.partialorder %v4262_v60, 0.0  ;;  %v440_v10 = vsel %vm424_vm6, %v4263_v61, 1.0  ;;  %v441_v54 = vsel %vm425_vm8, %v4264_v62, 1.0  ;;  %v3239_v56 = vsel %vm426_vm15, %v4265_v3, 1.0  ;;  %v4284_v2 = vld [vmem:[#allocation41_spill] sm:$0xff] }
  0xe9   :  { %4260 = vst [vmem:[#allocation12_spill] sm:$0xff] %v3226_v1  ;;  %1374 = vrcp.f32 %v4266_v32  ;;  %v3245_v7 = vsel %vm427_vm12, %v4267_v30, 1.0  ;;  %v3250_v59 = vsel %vm428_vm2, %v4268_v23, 1.0  ;;  %v3255_v33 = vsel %vm429_vm1, %v4269_v11, 1.0  ;;  %v4286_v27 = vld [vmem:[#allocation45_spill] sm:$0xff]  ;;  %v4288_v36 = vld [vmem:[#allocation8_spill] sm:$0xff] }
  0xea   :  { %1376 = vrcp.f32 %v4270_v50  ;;  %v3259_v52 = vadd.f32 %v407_v26, %v4271_v51  ;;  %v3264_v35 = vsel %vm430_vm13, %v4273_v45, 1.0  ;;  %v3269_v19 = vsel %vm431_vm3, %v4274_v0, 1.0  ;;  %v4287_v26 = vld [vmem:[#allocation24_spill] sm:$0xff]  ;;  %v4290_v30 = vld [vmem:[#allocation89_spill] sm:$0xff]  ;;  %v4293_v45 = vld [vmem:[#allocation47_spill] sm:$0xff] }
  0xeb   :  { %v3274_v9 = vsel %vm432_vm0, %v4275_v41, 1.0  ;;  %v3279_v55 = vsel %vm433_vm14, %v4276_v44, 1.0  ;;  %v3284_v21 = vsel %vm434_vm4, %v4277_v57, 1.0  ;;  %v520_v24 = vsub.f32 1.0, %v4278_v13  ;;  %v4291_v23 = vld [vmem:[#allocation25_spill] sm:$0xff]  ;;  %v4294_v41 = vld [vmem:[#allocation92_spill] sm:$0xff] }
  0xec   :  { %4272 = vst [vmem:[#allocation50_spill] sm:$0xff] %v3259_v52  ;;  %v521_v48 = vsub.f32 1.0, %v4279_v38  ;;  %v3291_v16 = vsel %vm435_vm5, %v2926_v25, 1.0  ;;  %v3296_v29 = vsel %vm436_vm7, %v2933_v6, 1.0  ;;  %v3301_v18 = vsel %vm437_vm9, %v2940_v39, 1.0  ;;  %v4285_v25 = vld [vmem:[#allocation7_spill] sm:$0xff] }
  0xed   :  { %4280 = vst [vmem:[#allocation33_spill] sm:$0xff] %v3291_v16  ;;  %4281 = vst [vmem:[#allocation13_spill] sm:$0xff] %v3296_v29  ;;  %1378 = vrcp.f32 %v4283_v34  ;;  %v504_v42 = vmul.f32 0.25, %v4278_v13  ;;  %v505_v58 = vmul.f32 0.25, %v4279_v38  ;;  %v522_v47 = vsub.f32 1.0, %v4285_v25  ;;  %v4289_v39 = vld [vmem:[#allocation46_spill] sm:$0xff] }
  0xee   :  { %4282 = vst [vmem:[#allocation51_spill] sm:$0xff] %v3301_v18  ;;  %1380 = vrcp.f32 %v4284_v2  ;;  %v506_v37 = vmul.f32 0.25, %v4285_v25  ;;  %v507_v6 = vmul.f32 0.25, %v4286_v27  ;;  %v508_v14 = vmul.f32 0.25, %v4287_v26  ;;  %v4292_v50 = vld [vmem:[#allocation9_spill] sm:$0xff]  ;;  %v4295_v44 = vld [vmem:[#allocation26_spill] sm:$0xff] }
  0xef   :  { %v509_v60 = vmul.f32 0.25, %v4288_v36  ;;  %v3313_v61 = vmul.f32 0.25, %v4289_v39  ;;  %v523_v62 = vsub.f32 1.0, %v4286_v27  ;;  %v536_v3 = vmul.f32 0.75, %v520_v24  ;;  %v4297_v34 = vld [vmem:[#allocation10_spill] sm:$0xff]  ;;  %v4298_v25 = vld [vmem:[#allocation48_spill] sm:$0xff] }
  0xf0   :  { %v537_v32 = vmul.f32 0.75, %v521_v48  ;;  %1382 = vrcp.f32 %v4290_v30  ;;  %v3318_v11 = vmul.f32 0.25, %v4291_v23  ;;  %v3321_v51 = vmul.f32 0.25, %v4292_v50  ;;  %v4296_v48 = vld [vmem:[#allocation98_spill] sm:$0xff]  ;;  %v4300_v30 = vld [vmem:[#allocation27_spill] sm:$0xff]  ;;  %v4307_v17 = vld [vmem:[#allocation100_spill] sm:$0xff] }
  0xf1   :  { %v3324_v0 = vmul.f32 0.25, %v4293_v45  ;;  %1384 = vrcp.f32 %v4294_v41  ;;  %v3328_v57 = vmul.f32 0.25, %v4295_v44  ;;  %v524_v13 = vsub.f32 1.0, %v4287_v26  ;;  %v4302_v26 = vld [vmem:[#allocation99_spill] sm:$0xff] }
  0xf2   :  { %v538_v24 = vmul.f32 0.75, %v522_v47  ;;  %1386 = vrcp.f32 %v4296_v48  ;;  %v3333_v2 = vmul.f32 0.25, %v4297_v34  ;;  %v3336_v27 = vmul.f32 0.25, %v4298_v25  ;;  %v4303_v47 = vld [vmem:[#allocation11_spill] sm:$0xff]  ;;  %v4305_v48 = vld [vmem:[#allocation49_spill] sm:$0xff] }
  0xf3   :  { %v1375_v38 = vpop.eup %1374  ;;  %v3339_v52 = vmul.f32 0.25, %v4300_v30  ;;  %v525_v41 = vsub.f32 1.0, %v4288_v36  ;;  %v539_v43 = vmul.f32 0.75, %v523_v62  ;;  %v552_v28 = vadd.f32 %v536_v3, %v504_v42 }
  0xf4   :  { %4299 = vst [vmem:[#allocation34_spill] sm:$0xff] %v3336_v27  ;;  %v1377_v1 = vpop.eup %1376  ;;  %v553_v18 = vadd.f32 %v537_v32, %v505_v58  ;;  %1388 = vrcp.f32 %v4302_v26  ;;  %v3344_v31 = vmul.f32 0.25, %v4303_v47  ;;  %v3347_v46 = vmul.f32 0.25, %v4305_v48  ;;  %v4308_v58 = vld [vmem:[#allocation101_spill] sm:$0xff]  ;;  %v4309_v27 = vld [vmem:[#allocation103_spill] sm:$0xff] }
  0xf5   :  { %4301 = vst [vmem:[#allocation14_spill] sm:$0xff] %v3339_v52  ;;  %v526_v29 = vsub.f32 1.0, %v4289_v39  ;;  %1390 = vrcp.f32 %v4307_v17  ;;  %v527_v52 = vsub.f32 1.0, %v4291_v23  ;;  %v540_v16 = vmul.f32 0.75, %v524_v13 }
  0xf6   :  { %4304 = vst [vmem:[#allocation91_spill] sm:$0xff] %v3344_v31  ;;  %4306 = vst [vmem:[#allocation52_spill] sm:$0xff] %v3347_v46  ;;  %v554_v53 = vadd.f32 %v538_v24, %v506_v37  ;;  %v473_v62 = vmul.f32 %v1375_v38, %v440_v10  ;;  %v475_v42 = vmul.f32 %v1377_v1, %v441_v54  ;;  %1392 = vrcp.f32 %v4308_v58 }
  0xf7   :  { %v1379_v36 = vpop.eup %1378  ;;  %v528_v3 = vsub.f32 1.0, %v4292_v50  ;;  %v541_v26 = vmul.f32 0.75, %v525_v41  ;;  %v555_v31 = vadd.f32 %v539_v43, %v507_v6  ;;  %v568_v46 = vmul.f32 %v552_v28, %v3151_v5  ;;  %v4310_v5 = vld [vmem:[#allocation104_spill] sm:$0xff] }
  0xf8   :  { %v1381_v32 = vpop.eup %1380  ;;  %v569_v39 = vmul.f32 %v553_v18, %v3159_v20  ;;  %1394 = vrcp.f32 %v4309_v27  ;;  %v529_v17 = vsub.f32 1.0, %v4293_v45  ;;  %v530_v37 = vsub.f32 1.0, %v4295_v44 }
  0xf9   :  { %v531_v10 = vsub.f32 1.0, %v4297_v34  ;;  %v477_v1 = vmul.f32 %v1379_v36, %v3239_v56  ;;  %v542_v54 = vmul.f32 0.75, %v526_v29  ;;  %v556_v23 = vadd.f32 %v540_v16, %v508_v14  ;;  %v4311_v56 = vld [vmem:[#allocation105_spill] sm:$0xff]  ;;  %v4313_v36 = vld [vmem:[#allocation108_spill] sm:$0xff] }
  0xfa   :  { %v570_v50 = vmul.f32 %v554_v53, %v3169_v12  ;;  %v1383_v13 = vpop.eup %1382  ;;  %v479_v43 = vmul.f32 %v1381_v32, %v3245_v7  ;;  %1396 = vrcp.f32 %v4310_v5  ;;  %v532_v20 = vsub.f32 1.0, %v4298_v25 }
  0xfb   :  { %v543_v28 = vmul.f32 0.75, %v527_v52  ;;  %v1385_v18 = vpop.eup %1384  ;;  %v557_v6 = vadd.f32 %v541_v26, %v509_v60  ;;  %v571_v45 = vmul.f32 %v555_v31, %v3172_v40  ;;  %v584_v44 = vmul.f32 %v568_v46, %v473_v62  ;;  %v4312_v40 = vld [vmem:[#allocation107_spill] sm:$0xff] }
  0xfc   :  { %v585_v24 = vmul.f32 %v569_v39, %v475_v42  ;;  %v1387_v38 = vpop.eup %1386  ;;  %1398 = vrcp.f32 %v4311_v56  ;;  %v533_v16 = vsub.f32 1.0, %v4300_v30  ;;  %v534_v12 = vsub.f32 1.0, %v4303_v47  ;;  %v4314_v39 = vld [vmem:[#allocation20_spill] sm:$0xff] }
  0xfd   :  { %v544_v53 = vmul.f32 0.75, %v528_v3  ;;  %v481_v7 = vmul.f32 %v1383_v13, %v3250_v59  ;;  %v558_v29 = vadd.f32 %v542_v54, %v3313_v61  ;;  %v572_v52 = vmul.f32 %v556_v23, %v3177_v4 }
  0xfe   :  { %v586_v14 = vmul.f32 %v570_v50, %v477_v1  ;;  %v1389_v60 = vpop.eup %1388  ;;  %v483_v31 = vmul.f32 %v1385_v18, %v3255_v33  ;;  %1400 = vrcp.f32 %v4312_v40  ;;  %v545_v46 = vmul.f32 0.75, %v529_v17  ;;  %v4321_v18 = vld [vmem:[#allocation16_spill] sm:$0xff]  ;;  %v4325_v40 = vld [vmem:[#allocation34_spill] sm:$0xff] }
  0xff   :  { %v559_v34 = vadd.f32 %v543_v28, %v3318_v11  ;;  %v1391_v25 = vpop.eup %1390  ;;  %v573_v27 = vmul.f32 %v557_v6, %v3180_v8  ;;  %v587_v30 = vmul.f32 %v571_v45, %v479_v43  ;;  %v600_v41 = vmul.f32 %v584_v44, %v473_v62  ;;  %v4320_v28 = vld [vmem:[#allocation109_spill] sm:$0xff] }
 0x100   :  { %v601_v47 = vmul.f32 %v585_v24, %v475_v42  ;;  %v1393_v59 = vpop.eup %1392  ;;  %v485_v61 = vmul.f32 %v1387_v38, %v3264_v35  ;;  %1402 = vrcp.f32 %v4313_v36  ;;  %v535_v4 = vsub.f32 1.0, %v4305_v48  ;;  %v4315_v48 = vld [vmem:[#allocation59_spill] sm:$0xff]  ;;  %v4330_v36 = vld [vmem:[#allocation14_spill] sm:$0xff] }
 0x101   :  { %v546_v58 = vmul.f32 0.75, %v530_v37  ;;  %v560_v33 = vadd.f32 %v544_v53, %v3321_v51  ;;  %v574_v3 = vmul.f32 %v558_v29, %v3184_v15  ;;  %v588_v32 = vmul.f32 %v572_v52, %v481_v7  ;;  %v4317_v51 = vld [vmem:[#allocation29_spill] sm:$0xff] }
 0x102   :  { %v602_v11 = vmul.f32 %v586_v14, %v477_v1  ;;  %v1395_v26 = vpop.eup %1394  ;;  %vm438_vm10 = vcmp.ge.f32.partialorder %v4314_v39, 0.0  ;;  %v487_v8 = vmul.f32 %v1389_v60, %v3269_v19  ;;  %v547_v62 = vmul.f32 0.75, %v531_v10  ;;  %v4319_v1 = vld [vmem:[#allocation54_spill] sm:$0xff]  ;;  %v4344_v39 = vld [vmem:[#allocation17_spill] sm:$0xff] }
 0x103   :  { %v561_v42 = vadd.f32 %v545_v46, %v3324_v0  ;;  %v575_v35 = vmul.f32 %v559_v34, %v3187_v63  ;;  %v589_v17 = vmul.f32 %v573_v27, %v483_v31  ;;  %v603_v54 = vmul.f32 %v587_v30, %v479_v43  ;;  %v4326_v34 = vld [vmem:[#allocation110_spill] sm:$0xff] }
 0x104   :  { %v4316_v37 = vmin.f32 %v4315_v48, 1.0  ;;  %v4318_v50 = vmin.f32 %v4317_v51, 1.0  ;;  %v1397_v13 = vpop.eup %1396  ;;  %vm439_vm11 = vcmp.ge.f32.partialorder %v4319_v1, 0.0  ;;  %v489_v5 = vmul.f32 %v1391_v25, %v3274_v9  ;;  %v4327_v27 = vld [vmem:[#allocation42_spill] sm:$0xff] }
 0x105   :  { %1404 = vrcp.f32 %v4320_v28  ;;  %v548_v19 = vmul.f32 0.75, %v532_v20  ;;  %v562_v0 = vadd.f32 %v546_v58, %v3328_v57  ;;  %v576_v63 = vmul.f32 %v560_v33, %v3190_v22  ;;  %v4323_v20 = vld [vmem:[#allocation4_spill] sm:$0xff]  ;;  %v4331_v33 = vld [vmem:[#allocation111_spill] sm:$0xff] }
 0x106   :  { %v616_v23 = vmul.f32 %v600_v41, %v4316_v37  ;;  %v617_v15 = vmul.f32 %v601_v47, %v4318_v50  ;;  %v590_v10 = vmul.f32 %v574_v3, %v485_v61  ;;  %v604_v43 = vmul.f32 %v588_v32, %v481_v7  ;;  %v1399_v44 = vpop.eup %1398  ;;  %v4332_v32 = vld [vmem:[#allocation60_spill] sm:$0xff]  ;;  %v4337_v50 = vld [vmem:[#allocation102_spill] sm:$0xff] }
 0x107   :  { %v4322_v6 = vmin.f32 %v4321_v18, 1.0  ;;  %v491_v24 = vmul.f32 %v1393_v59, %v3279_v55  ;;  %v549_v38 = vmul.f32 0.75, %v533_v16  ;;  %v563_v56 = vadd.f32 %v547_v62, %v3333_v2 }
 0x108   :  { %v577_v9 = vmul.f32 %v561_v42, %v3193_v49  ;;  %v591_v53 = vmul.f32 %v575_v35, %v487_v8  ;;  %v605_v29 = vmul.f32 %v589_v17, %v483_v31  ;;  %v4324_v52 = vmin.f32 %v4323_v20, 1.0  ;;  %v1401_v22 = vpop.eup %1400  ;;  %v4329_v31 = vld [vmem:[#allocation33_spill] sm:$0xff]  ;;  %v4335_v35 = vld [vmem:[#allocation91_spill] sm:$0xff] }
 0x109   :  { %v618_v45 = vmul.f32 %v602_v11, %v4322_v6  ;;  %v632_v14 = vadd.f32 %v617_v15, %v616_v23  ;;  %v493_v7 = vmul.f32 %v1395_v26, %v3284_v21  ;;  %v550_v60 = vmul.f32 0.75, %v534_v12  ;;  %v4334_v42 = vld [vmem:[#allocation13_spill] sm:$0xff] }
 0x10a   :  { %v619_v57 = vmul.f32 %v603_v54, %v4324_v52  ;;  %v564_v46 = vadd.f32 %v548_v19, %v4325_v40  ;;  %v578_v25 = vmul.f32 %v562_v0, %v4326_v34  ;;  %v592_v55 = vmul.f32 %v576_v63, %v489_v5  ;;  %v1403_v41 = vpop.eup %1402  ;;  %v4336_v54 = vld [vmem:[#allocation28_spill] sm:$0xff]  ;;  %v4340_v63 = vld [vmem:[#allocation51_spill] sm:$0xff] }
 0x10b   :  { %v606_v16 = vmul.f32 %v590_v10, %v485_v61  ;;  %v4328_v2 = vmin.f32 %v4327_v27, 1.0  ;;  %v633_v49 = vadd.f32 %v632_v14, %v618_v45  ;;  %v495_v47 = vmul.f32 %v1397_v13, %v4329_v31  ;;  %v4338_v13 = vld [vmem:[#allocation30_spill] sm:$0xff]  ;;  %v4342_v45 = vld [vmem:[#allocation32_spill] sm:$0xff] }
 0x10c   :  { %v551_v59 = vmul.f32 0.75, %v535_v4  ;;  %v565_v58 = vadd.f32 %v549_v38, %v4330_v36  ;;  %v579_v3 = vmul.f32 %v563_v56, %v4331_v33  ;;  %v593_v21 = vmul.f32 %v577_v9, %v491_v24  ;;  %v4343_v56 = vld [vmem:[#allocation106_spill] sm:$0xff]  ;;  %v4346_v14 = vld [vmem:[#allocation12_spill] sm:$0xff] }
 0x10d   :  { %v620_v30 = vmul.f32 %v604_v43, %v4328_v2  ;;  %v607_v12 = vmul.f32 %v591_v53, %v487_v8  ;;  %v4333_v11 = vmin.f32 %v4332_v32, 1.0  ;;  %v634_v62 = vadd.f32 %v633_v49, %v619_v57  ;;  %v4341_v43 = vld [vmem:[#allocation52_spill] sm:$0xff]  ;;  %v4350_v2 = vld [vmem:[#allocation2_spill] sm:$0xff] }
 0x10e   :  { %v497_v61 = vmul.f32 %v1399_v44, %v4334_v42  ;;  %v566_v17 = vadd.f32 %v550_v60, %v4335_v35  ;;  %v580_v37 = vmul.f32 %v564_v46, %v4336_v54  ;;  %v594_v23 = vmul.f32 %v578_v25, %v493_v7  ;;  %v4357_v42 = vld [vmem:[#allocation6_spill] sm:$0xff] }
 0x10f   :  { %v621_v26 = vmul.f32 %v605_v29, %v4333_v11  ;;  %v454_v4 = vsel %vm438_vm10, %v4337_v50, 1.0  ;;  %v608_v15 = vmul.f32 %v592_v55, %v489_v5  ;;  %v4339_v28 = vmin.f32 %v4338_v13, 1.0  ;;  %v1405_v0 = vpop.eup %1404 }
 0x110   :  { %v635_v8 = vadd.f32 %v634_v62, %v620_v30  ;;  %v499_v10 = vmul.f32 %v1401_v22, %v4340_v63  ;;  %v567_v6 = vadd.f32 %v551_v59, %v4341_v43  ;;  %v581_v44 = vmul.f32 %v565_v58, %v4342_v45  ;;  %v4347_v22 = vld [vmem:[#allocation5_spill] sm:$0xff]  ;;  %v4351_v30 = vld [vmem:[#allocation50_spill] sm:$0xff] }
 0x111   :  { %v622_v19 = vmul.f32 %v606_v16, %v4339_v28  ;;  %v595_v38 = vmul.f32 %v579_v3, %v495_v47  ;;  %v455_v9 = vsel %vm439_vm11, %v4343_v56, 1.0  ;;  %v609_v53 = vmul.f32 %v593_v21, %v491_v24  ;;  %v4349_v16 = vld [vmem:[#allocation3_spill] sm:$0xff]  ;;  %v4352_v59 = vld [vmem:[#allocation18_spill] sm:$0xff] }
 0x112   :  { %v4345_v29 = vmin.f32 %v4344_v39, 1.0  ;;  %v636_v52 = vadd.f32 %v635_v8, %v621_v26  ;;  %v501_v57 = vmul.f32 %v1403_v41, %v454_v4  ;;  %v582_v60 = vmul.f32 %v566_v17, %v4346_v14  ;;  %v4353_v41 = vld [vmem:[#allocation43_spill] sm:$0xff]  ;;  %v4358_v17 = vld [vmem:[#allocation61_spill] sm:$0xff] }
 0x113   :  { %v596_v40 = vmul.f32 %v580_v37, %v497_v61  ;;  %v610_v46 = vmul.f32 %v594_v23, %v493_v7  ;;  %v4348_v34 = vmin.f32 %v4347_v22, 1.0  ;;  %vm1107_vm6 = vcmp.eq.f32.partialorder %v4349_v16, 3.0  ;;  %v4355_v7 = vld [vmem:[#allocation63_spill] sm:$0xff]  ;;  %v4360_v23 = vld [vmem:[#allocation64_spill] sm:$0xff] }
 0x114   :  { %v623_v5 = vmul.f32 %v607_v12, %v4345_v29  ;;  %v637_v55 = vadd.f32 %v636_v52, %v622_v19  ;;  %vm1108_vm8 = vcmp.eq.f32.partialorder %v4350_v2, 3.0  ;;  %v503_v1 = vmul.f32 %v1405_v0, %v455_v9  ;;  %v4363_v0 = vld [vmem:[#allocation65_spill] sm:$0xff]  ;;  %v4367_v29 = vld [vmem:[#allocation66_spill] sm:$0xff] }
 0x115   :  { %v624_v25 = vmul.f32 %v608_v15, %v4348_v34  ;;  %v583_v24 = vmul.f32 %v567_v6, %v4351_v30  ;;  %v597_v49 = vmul.f32 %v581_v44, %v499_v10  ;;  %v611_v31 = vmul.f32 %v595_v38, %v495_v47  ;;  %v4361_v15 = vld [vmem:[#allocation31_spill] sm:$0xff]  ;;  %v4366_v44 = vld [vmem:[#allocation44_spill] sm:$0xff] }
 0x116   :  { %v116_v36 = vmin.f32 %v4352_v59, 1.0  ;;  %v4354_v58 = vmin.f32 %v4353_v41, 1.0  ;;  %v638_v3 = vadd.f32 %v637_v55, %v623_v5  ;;  %vm1109_vm15 = vcmp.eq.f32.partialorder %v4355_v7, 3.0  ;;  %v4370_v34 = vld [vmem:[#allocation67_spill] sm:$0xff]  ;;  %v4374_v7 = vld [vmem:[#allocation69_spill] sm:$0xff] }
 0x117   :  { %v598_v21 = vmul.f32 %v582_v60, %v501_v57  ;;  %v612_v12 = vmul.f32 %v596_v40, %v497_v61  ;;  %v4356_v11 = vmov 0.0   ;;  %v117_v35 = vmin.f32 %v4357_v42, 1.0  ;;  %v4369_v60 = vld [vmem:[#allocation62_spill] sm:$0xff]  ;;  %v4391_v59 = vld [vmem:[#allocation79_spill] sm:$0xff] }
 0x118   :  { %v625_v33 = vmul.f32 %v609_v53, %v4354_v58  ;;  %v1135_v26 = vsel %vm1107_vm6, 1.0, %v4356_v11  ;;  %v1136_v62 = vsel %vm1108_vm8, 1.0, %v4356_v11  ;;  %v4359_v54 = vmin.f32 %v4358_v17, 1.0 }
 0x119   :  { %v639_v47 = vadd.f32 %v638_v3, %v624_v25  ;;  %vm1110_vm12 = vcmp.eq.f32.partialorder %v4360_v23, 3.0  ;;  %v599_v50 = vmul.f32 %v583_v24, %v503_v1  ;;  %v613_v4 = vmul.f32 %v597_v49, %v499_v10  ;;  %v4372_v24 = vld [vmem:[#allocation68_spill] sm:$0xff] }
 0x11a   :  { %v626_v37 = vmul.f32 %v610_v46, %v4359_v54  ;;  %v4362_v28 = vmin.f32 %v4361_v15, 1.0  ;;  %v1137_v8 = vsel %vm1109_vm15, 1.0, %v4356_v11  ;;  %vm1111_vm2 = vcmp.eq.f32.partialorder %v4363_v0, 3.0  ;;  %v4376_v54 = vld [vmem:[#allocation70_spill] sm:$0xff] }
 0x11b   :  { %v640_v61 = vadd.f32 %v639_v47, %v625_v33  ;;  %v1199_v63 = vadd.f32 %v1136_v62, %v1135_v26  ;;  %v4364_v43 = vmin.f32 %v4315_v48, 1.0  ;;  %v4365_v6 = vmin.f32 %v4317_v51, 1.0 }
 0x11c   :  { %v627_v19 = vmul.f32 %v611_v31, %v4362_v28  ;;  %v118_v38 = vmin.f32 %v4366_v44, 1.0  ;;  %v614_v56 = vmul.f32 %v598_v21, %v501_v57  ;;  %v628_v10 = vmul.f32 %v612_v12, %v116_v36 }
 0x11d   :  { %v656_v45 = vadd.f32 %v4365_v6, %v4364_v43  ;;  %v1138_v9 = vsel %vm1110_vm12, 1.0, %v4356_v11  ;;  %v641_v53 = vadd.f32 %v640_v61, %v626_v37  ;;  %vm1112_vm1 = vcmp.eq.f32.partialorder %v4367_v29, 3.0  ;;  %v4380_v61 = vld [vmem:[#allocation72_spill] sm:$0xff]  ;;  %v4382_v6 = vld [vmem:[#allocation73_spill] sm:$0xff] }
 0x11e   :  { %v1200_v5 = vadd.f32 %v1199_v63, %v1137_v8  ;;  %v4368_v52 = vmin.f32 %v4321_v18, 1.0  ;;  %v119_v48 = vmin.f32 %v4369_v60, 1.0  ;;  %v615_v40 = vmul.f32 %v599_v50, %v503_v1 }
 0x11f   :  { %v629_v51 = vmul.f32 %v613_v4, %v117_v35  ;;  %v1139_v57 = vsel %vm1111_vm2, 1.0, %v4356_v11  ;;  %v642_v46 = vadd.f32 %v641_v53, %v627_v19  ;;  %vm1113_vm13 = vcmp.eq.f32.partialorder %v4370_v34, 3.0  ;;  %v4378_v4 = vld [vmem:[#allocation71_spill] sm:$0xff] }
 0x120   :  { %v657_v14 = vadd.f32 %v656_v45, %v4368_v52  ;;  %v1201_v25 = vadd.f32 %v1200_v5, %v1138_v9  ;;  %v4371_v55 = vmin.f32 %v4323_v20, 1.0  ;;  %v630_v2 = vmul.f32 %v614_v56, %v118_v38  ;;  %v4384_v9 = vld [vmem:[#allocation74_spill] sm:$0xff] }
 0x121   :  { %v1140_v18 = vsel %vm1112_vm1, 1.0, %v4356_v11  ;;  %v643_v30 = vadd.f32 %v642_v46, %v628_v10  ;;  %vm1114_vm3 = vcmp.eq.f32.partialorder %v4372_v24, 3.0  ;;  %v4373_v49 = vmin.f32 %v4327_v27, 1.0 }
 0x122   :  { %v658_v16 = vadd.f32 %v657_v14, %v4371_v55  ;;  %v1202_v1 = vadd.f32 %v1201_v25, %v1139_v57  ;;  %v631_v58 = vmul.f32 %v615_v40, %v119_v48  ;;  %v1141_v33 = vsel %vm1113_vm13, 1.0, %v4356_v11 }
 0x123   :  { %v644_v3 = vadd.f32 %v643_v30, %v629_v51  ;;  %vm1115_vm0 = vcmp.eq.f32.partialorder %v4374_v7, 3.0  ;;  %v4375_v21 = vmin.f32 %v4332_v32, 1.0  ;;  %v1142_v26 = vsel %vm1114_vm3, 1.0, %v4356_v11  ;;  %v4395_v7 = vld [vmem:[#allocation83_spill] sm:$0xff] }
 0x124   :  { %v659_v31 = vadd.f32 %v658_v16, %v4373_v49  ;;  %v1203_v20 = vadd.f32 %v1202_v1, %v1140_v18  ;;  %vm1116_vm14 = vcmp.eq.f32.partialorder %v4376_v54, 3.0  ;;  %v4377_v47 = vmin.f32 %v4338_v13, 1.0  ;;  %v4392_v49 = vld [vmem:[#allocation80_spill] sm:$0xff] }
 0x125   :  { %v645_v62 = vadd.f32 %v644_v3, %v630_v2  ;;  %v1143_v23 = vsel %vm1115_vm0, 1.0, %v4356_v11  ;;  %vm1117_vm4 = vcmp.eq.f32.partialorder %v4378_v4, 3.0  ;;  %v4379_v19 = vmin.f32 %v4344_v39, 1.0 }
 0x126   :  { %v660_v12 = vadd.f32 %v659_v31, %v4375_v21  ;;  %v1204_v37 = vadd.f32 %v1203_v20, %v1141_v33  ;;  %v1144_v32 = vsel %vm1116_vm14, 1.0, %v4356_v11  ;;  %vm1118_vm5 = vcmp.eq.f32.partialorder %v4380_v61, 3.0  ;;  %v4393_v31 = vld [vmem:[#allocation81_spill] sm:$0xff]  ;;  %v4396_v21 = vld [vmem:[#allocation84_spill] sm:$0xff] }
 0x127   :  { %v646_v50 = vadd.f32 %v645_v62, %v631_v58  ;;  %v4381_v63 = vmin.f32 %v4347_v22, 1.0  ;;  %v1145_v13 = vsel %vm1117_vm4, 1.0, %v4356_v11  ;;  %vm1119_vm7 = vcmp.eq.f32.partialorder %v4382_v6, 3.0  ;;  %v4386_v22 = vld [vmem:[#allocation75_spill] sm:$0xff]  ;;  %v4397_v62 = vld [vmem:[#allocation85_spill] sm:$0xff] }
 0x128   :  { %v661_v27 = vadd.f32 %v660_v12, %v4377_v47  ;;  %v1205_v28 = vadd.f32 %v1204_v37, %v1142_v26  ;;  %v4383_v56 = vmin.f32 %v4353_v41, 1.0  ;;  %v1146_v39 = vsel %vm1118_vm5, 1.0, %v4356_v11  ;;  %v4388_v41 = vld [vmem:[#allocation76_spill] sm:$0xff]  ;;  %v4398_v47 = vld [vmem:[#allocation86_spill] sm:$0xff] }
 0x129   :  { %647 = vadd.xlane.f32.xlu0 %v646_v50  ;;  %vm1120_vm9 = vcmp.eq.f32.partialorder %v4384_v9, 3.0  ;;  %v4385_v29 = vmin.f32 %v4358_v17, 1.0  ;;  %v1147_v52 = vsel %vm1119_vm7, 1.0, %v4356_v11  ;;  %vm1121_vm10 = vcmp.eq.f32.partialorder %v4386_v22, 3.0  ;;  %v4389_v17 = vld [vmem:[#allocation77_spill] sm:$0xff]  ;;  %v4399_v50 = vld [vmem:[#allocation87_spill] sm:$0xff] }
 0x12a   :  { %v662_v8 = vadd.f32 %v661_v27, %v4379_v19  ;;  %v1206_v0 = vadd.f32 %v1205_v28, %v1143_v23  ;;  %v4387_v60 = vmin.f32 %v4361_v15, 1.0  ;;  %v1148_v51 = vsel %vm1120_vm9, 1.0, %v4356_v11  ;;  %v4390_v15 = vld [vmem:[#allocation78_spill] sm:$0xff]  ;;  %v4400_v19 = vld [vmem:[#allocation88_spill] sm:$0xff] }
 0x12b   :  { %vm1122_vm11 = vcmp.eq.f32.partialorder %v4388_v41, 3.0  ;;  %v1149_v34 = vsel %vm1121_vm10, 1.0, %v4356_v11  ;;  %vm1123_vm6 = vcmp.eq.f32.partialorder %v4389_v17, 3.0  ;;  %vm1124_vm8 = vcmp.eq.f32.partialorder %v4390_v15, 3.0 }
 0x12c   :  { %v663_v43 = vadd.f32 %v662_v8, %v4381_v63  ;;  %v1207_v45 = vadd.f32 %v1206_v0, %v1144_v32  ;;  %v1150_v16 = vsel %vm1122_vm11, 1.0, %v4356_v11  ;;  %v1151_v30 = vsel %vm1123_vm6, 1.0, %v4356_v11 }
 0x12d   :  { %vm1125_vm15 = vcmp.eq.f32.partialorder %v4391_v59, 3.0  ;;  %v1152_v1 = vsel %vm1124_vm8, 1.0, %v4356_v11  ;;  %vm1126_vm12 = vcmp.eq.f32.partialorder %v4392_v49, 3.0  ;;  %vm1127_vm2 = vcmp.eq.f32.partialorder %v4393_v31, 3.0 }
 0x12e   :  { %v664_v10 = vadd.f32 %v663_v43, %v4383_v56  ;;  %v1208_v53 = vadd.f32 %v1207_v45, %v1145_v13  ;;  %v1154_v44 = vsel %vm1126_vm12, 1.0, %v4356_v11  ;;  %v1155_v3 = vsel %vm1127_vm2, 1.0, %v4356_v11 }
 0x12f   :  { %vm1129_vm13 = vcmp.eq.f32.partialorder %v4395_v7, 3.0  ;;  %vm1130_vm3 = vcmp.eq.f32.partialorder %v4396_v21, 3.0  ;;  %vm1131_vm0 = vcmp.eq.f32.partialorder %v4397_v62, 3.0  ;;  %vm1132_vm14 = vcmp.eq.f32.partialorder %v4398_v47, 3.0 }
 0x130   :  { %v665_v5 = vadd.f32 %v664_v10, %v4385_v29  ;;  %v1209_v14 = vadd.f32 %v1208_v53, %v1146_v39  ;;  %v1157_v26 = vsel %vm1129_vm13, 1.0, %v4356_v11  ;;  %v1158_v37 = vsel %vm1130_vm3, 1.0, %v4356_v11 }
 0x131   :  { %v1159_v23 = vsel %vm1131_vm0, 1.0, %v4356_v11  ;;  %vm1133_vm4 = vcmp.eq.f32.partialorder %v4399_v50, 3.0  ;;  %v1160_v28 = vsel %vm1132_vm14, 1.0, %v4356_v11  ;;  %vm1134_vm5 = vcmp.eq.f32.partialorder %v4400_v19, 3.0 }
 0x132   :  { %v666_v40 = vadd.f32 %v665_v5, %v4387_v60  ;;  %v1210_v57 = vadd.f32 %v1209_v14, %v1147_v52  ;;  %v1161_v32 = vsel %vm1133_vm4, 1.0, %v4356_v11  ;;  %v1162_v0 = vsel %vm1134_vm5, 1.0, %v4356_v11  ;;  %v1191_v56 = vpop.xlane.xlu1 %1190 }
 0x133   :  { %v1192_v9 = vrot.slane %v1191_v56, 4 }
 0x134   :  { %v667_v46 = vadd.f32 %v666_v40, %v116_v36  ;;  %v1211_v25 = vadd.f32 %v1210_v57, %v1148_v51 }
 0x135   :  { %v1193_v5 = vadd.f32 %v1192_v9, %v1191_v56 }
 0x136   :  { %v668_v55 = vadd.f32 %v667_v46, %v117_v35  ;;  %v1212_v2 = vadd.f32 %v1211_v25, %v1149_v34  ;;  %v1153_v35 = vsel %vm1125_vm15, 1.0, %v4356_v11 }
 0x137   :  { %v1194_v22 = vrot.slane %v1193_v5, 2 }
 0x138   :  { %v669_v18 = vadd.f32 %v668_v55, %v118_v38  ;;  %v1213_v36 = vadd.f32 %v1212_v2, %v1150_v16  ;;  %v4394_v38 = vld [vmem:[#allocation82_spill] sm:$0xff] }
 0x139   :  { %vm1128_vm1 = vcmp.eq.f32.partialorder %v4394_v38, 3.0  ;;  %v1195_v40 = vadd.f32 %v1194_v22, %v1193_v5 }
 0x13a   :  { %v670_v24 = vadd.f32 %v669_v18, %v119_v48  ;;  %v1214_v42 = vadd.f32 %v1213_v36, %v1151_v30  ;;  %v1156_v20 = vsel %vm1128_vm1, 1.0, %v4356_v11  ;;  %v1235_v30 = vlaneseq }
 0x13b   :  { %v1196_v41 = vrot.slane %v1195_v40, 1 }
 0x13c   :  { %671 = vadd.xlane.f32.xlu0 %v670_v24  ;;  %v1215_v58 = vadd.f32 %v1214_v42, %v1152_v1  ;;  %v1236_v59 = vshrl.u32 %v1235_v30, 7 }
 0x13d   :  { %v1197_v34 = vadd.f32 %v1196_v41, %v1195_v40 }
 0x13e   :  { %v1216_v33 = vadd.f32 %v1215_v58, %v1153_v35  ;;  %vm1240_vm7 = vcmp.eq.s32.totalorder %v1236_v59, 1  ;;  %vm1237_vm9 = vcmp.eq.s32.totalorder %v1236_v59, 0  ;;  %vm1244_vm10 = vcmp.eq.s32.totalorder %v1236_v59, 2 }
 0x13f   :  { %vm1248_vm11 = vcmp.eq.s32.totalorder %v1236_v59, 3 }
 0x140   :  { %v1217_v48 = vadd.f32 %v1216_v33, %v1154_v44 }
 0x142   :  { %v1218_v12 = vadd.f32 %v1217_v48, %v1155_v3 }
 0x144   :  { %v1219_v54 = vadd.f32 %v1218_v12, %v1156_v20 }
 0x146   :  { %v1220_v27 = vadd.f32 %v1219_v54, %v1157_v26 }
 0x148   :  { %v1221_v4 = vadd.f32 %v1220_v27, %v1158_v37 }
 0x14a   :  { %v1222_v8 = vadd.f32 %v1221_v4, %v1159_v23 }
 0x14c   :  { %v1223_v61 = vadd.f32 %v1222_v8, %v1160_v28 }
 0x14e   :  { %v1224_v63 = vadd.f32 %v1223_v61, %v1161_v32 }
 0x150   :  { %v1225_v43 = vadd.f32 %v1224_v63, %v1162_v0 }
 0x152   :  { %1226 = vadd.xlane.f32.xlu1 %v1225_v43 }
 0x1b6   :  { %v648_v13 = vpop.xlane.xlu0 %647 }
 0x1b7   :  { %v649_v6 = vrot.slane %v648_v13, 4 }
 0x1b9   :  { %v650_v45 = vadd.f32 %v649_v6, %v648_v13 }
 0x1bb   :  { %v651_v10 = vrot.slane %v650_v45, 2 }
 0x1bd   :  { %v652_v39 = vadd.f32 %v651_v10, %v650_v45 }
 0x1bf   :  { %v653_v53 = vrot.slane %v652_v39, 1 }
 0x1c1   :  { %v654_v29 = vadd.f32 %v653_v53, %v652_v39 }
 0x1c3   :  { %1301 = vpush %v654_v29 }
 0x1c9   :  { %v672_v52 = vpop.xlane.xlu0 %671 }
 0x1ca   :  { %v673_v14 = vrot.slane %v672_v52, 4 }
 0x1cc   :  { %v674_v60 = vadd.f32 %v673_v14, %v672_v52 }
 0x1ce   :  { %v675_v11 = vrot.slane %v674_v60, 2 }
 0x1d0   :  { %v676_v51 = vadd.f32 %v675_v11, %v674_v60 }
 0x1d2   :  { %v677_v57 = vrot.slane %v676_v51, 1 }
 0x1d4   :  { %v678_v46 = vadd.f32 %v677_v57, %v676_v51 }
 0x1d6   :  { %1303 = vpush %v678_v46 }
 0x1d7   :  { %1305 = vpush %v1197_v34 }
 0x1df   :  { %v1227_v17 = vpop.xlane.xlu1 %1226 }
 0x1e0   :  { %v1228_v25 = vrot.slane %v1227_v17, 4 }
 0x1e2   :  { %v1229_v55 = vadd.f32 %v1228_v25, %v1227_v17 }
 0x1e4   :  { %v1230_v16 = vrot.slane %v1229_v55, 2 }
 0x1e6   :  { %v1231_v15 = vadd.f32 %v1230_v16, %v1229_v55 }
 0x1e8   :  { %v1232_v2 = vrot.slane %v1231_v15, 1 }
 0x1ea   :  { %v1233_v18 = vadd.f32 %v1232_v2, %v1231_v15 }
 0x1ec   :  { %1307 = vpush %v1233_v18 }
 0x1f4   :  { %s1302_s0 = spop %1301 }
 0x1f5   :  { %v1238_v24 = vstv %s1302_s0 }
 0x1f6   :  { %v1239_v49 = vsel %vm1237_vm9, %v1238_v24, 0.0 }
 0x207   :  { %s1304_s26 = spop %1303 }
 0x208   :  { %v1241_v36 = vstv %s1304_s26  ;;  %s1306_s27 = spop %1305 }
 0x209   :  { %v1242_v1 = vsel %vm1240_vm7, %v1241_v36, 0.0  ;;  %v1245_v35 = vstv %s1306_s27 }
 0x20a   :  { %v1243_v42 = vadd.f32 %v1242_v1, %v1239_v49  ;;  %v1246_v31 = vsel %vm1244_vm10, %v1245_v35, 0.0 }
 0x20c   :  { %v1247_v58 = vadd.f32 %v1246_v31, %v1243_v42 }
 0x21d   :  { %s1308_s28 = spop %1307 }
 0x21e   :  { %v1249_v44 = vstv %s1308_s28 }
 0x21f   :  { %v1250_v38 = vsel %vm1248_vm11, %v1249_v44, 0.0 }
 0x220   :  { %v1251_v33 = vadd.f32 %v1250_v38, %v1247_v58 }
 0x222   :  { %1252 = vst [vmem:[%s3541_s5] sm:$0xff] %v1251_v33 }

</bundles_post_ra>
